<compile_context>
chip_gen: v7x
topology: tpu7x:2x2x1
jax: 0.10.0
libtpu: 0.0.40
codegen_flags: <defaults>
</compile_context>

<pallas_src>
import functools
import math

import jax
import jax.numpy as jnp
from jax.experimental import pallas as pl
from jax.experimental.pallas import tpu as pltpu

LN_EPS = 1e-5  # PyTorch nn.LayerNorm default
HIGHEST = jax.lax.Precision.HIGHEST


# ----------------------------- fused Pallas kernel -----------------------------

def s4_block_kernel(x_ref, gamma_ref, beta_ref, k_ref, dskip_ref, w_ref, bias_ref,
                    o_ref, *, n_taps):
    # x block: (1, L, D) raw input for one batch element (also the residual source)
    x = x_ref[0]                                               # (L, D)
    d_model = x.shape[1]

    # ---- LayerNorm over the feature (lane) axis ------------------------------
    mean = jnp.mean(x, axis=-1, keepdims=True)
    var = jnp.mean((x - mean) ** 2, axis=-1, keepdims=True)
    xn = (x - mean) * jax.lax.rsqrt(var + LN_EPS) * gamma_ref[...] + beta_ref[...]

    # ---- S4D causal depthwise conv -------------------------------------------
    # Transpose in VMEM so time sits on lanes: the shift goes to the XLU slot
    # (pltpu.roll) and the tap FMA to the VALU slots; no MXU, no L x L matrices.
    xt = xn.T                                                  # (D, L)
    t_idx = jax.lax.broadcasted_iota(jnp.int32, xt.shape, 1)   # hoisted once per block
    k = k_ref[...]                                             # (D, l_max)

    acc = k[:, 0:1] * xt                                       # s = 0 tap
    # TODO(synk): for large l_max switch to lax.fori_loop with a dynamic roll shift;
    # at small l_max a static unroll keeps the LLO scheduler fully effective.
    for s in range(1, n_taps):
        rolled = pltpu.roll(xt, shift=s, axis=1)               # xt[:, t-s] (circular)
        acc = acc + k[:, s:s + 1] * jnp.where(t_idx >= s, rolled, 0.0)
    y = (acc + dskip_ref[...] * xt).T                          # + D * x skip, back to (L, D)

    # ---- Linear(d -> 2d) + GLU + residual -------------------------------------
    # Single (L, D) @ (D, 2D) matmul; GLU halves sliced in VMEM.
    # f32 + HIGHEST keeps the output matching the exact-f32 FFT reference at the
    # 2e-3 tolerance; at production scale cast y / W to bf16 (f32 accumulate) for
    # full MXU rate on v6e/v7x.
    z = jnp.dot(y, w_ref[...], preferred_element_type=jnp.float32,
                precision=HIGHEST) + bias_ref[...]
    a = z[:, :d_model]
    g = z[:, d_model:]
    # F.glu (first half * sigmoid(second half)); dropout = identity in eval mode.
    o_ref[0] = x + a * jax.nn.sigmoid(g)


# --------------------- parameter-only setup (plain JAX glue) ---------------------

def compute_ssm_kernel(params, l_max):
    # Mirrors S4DKernel._compute_kernel (bilinear discretization).
    n = params["L"].shape[1]
    eye = jnp.eye(n, dtype=jnp.float32)
    L_mat = jnp.exp(params["L"])[:, :, None] * eye[None]                 # diag_embed(exp(L))
    P = jnp.einsum("dnk,dkm->dnm", params["P_left"], params["P_right"],
                   precision=HIGHEST)                                    # low-rank term
    A = -L_mat + P
    dt = jnp.exp(params["log_dt"])                                       # (d, 1)
    A = A * dt[:, :, None]
    B = params["B"] * dt                                                 # (d, n)
    I = eye[None]
    # TODO(synk): batched linear solve has no Pallas primitive; kept in plain JAX
    # (parameter-only setup, independent of the activation).
    dA = jnp.linalg.solve(I - A / 2.0, I + A / 2.0)                      # (d, n, n)
    dB = jnp.linalg.solve(I - A / 2.0, B[..., None])                     # (d, n, 1)

    C = params["C"]

    def step(state, _):
        k_t = jnp.einsum("dn,dn->d", C, state[..., 0], precision=HIGHEST)
        new_state = jnp.einsum("dij,djk->dik", dA, state, precision=HIGHEST)
        return new_state, k_t

    _, ks = jax.lax.scan(step, dB, None, length=l_max)                   # (l_max, d)
    return ks.T                                                          # (d, l_max)


# ----------------------------- forward (Pallas path) -----------------------------

def s4block2d_forward(x, params, l_max):
    B_, L_, D_ = x.shape
    # The linear-causal conv equals the module's circular FFT conv (2*l_max padded,
    # truncated to L) only when L <= l_max.
    assert L_ <= l_max, "Pallas causal-conv path requires L <= l_max"

    ssm_k = compute_ssm_kernel(params, l_max)                            # (D, l_max)
    n_taps = min(l_max, L_)

    kernel = functools.partial(s4_block_kernel, n_taps=n_taps)
    out = pl.pallas_call(
        kernel,
        out_shape=jax.ShapeDtypeStruct((B_, L_, D_), jnp.float32),
        grid_spec=pltpu.PrefetchScalarGridSpec(
            num_scalar_prefetch=0,
            grid=(B_,),
            in_specs=[
                pl.BlockSpec((1, L_, D_), lambda b: (b, 0, 0)),          # x (residual)
                pl.BlockSpec((1, D_), lambda b: (0, 0)),                 # LN gamma
                pl.BlockSpec((1, D_), lambda b: (0, 0)),                 # LN beta
                pl.BlockSpec((D_, l_max), lambda b: (0, 0)),             # SSM conv kernel
                pl.BlockSpec((D_, 1), lambda b: (0, 0)),                 # D skip
                pl.BlockSpec((D_, 2 * D_), lambda b: (0, 0)),            # proj W (full GLU)
                pl.BlockSpec((1, 2 * D_), lambda b: (0, 0)),             # proj bias
            ],
            out_specs=pl.BlockSpec((1, L_, D_), lambda b: (b, 0, 0)),
        ),
        compiler_params=pltpu.CompilerParams(
            dimension_semantics=("parallel",),                           # megacore split on v7x
        ),
    )(
        x,
        params["ln_gamma"].reshape(1, D_),
        params["ln_beta"].reshape(1, D_),
        ssm_k,
        params["D"].reshape(D_, 1),
        params["W"],
        params["b"].reshape(1, 2 * D_),
    )
    return out


# ------------------ pure-JAX reference (FFT path, mirrors PyTorch) ------------------

def s4block2d_reference(x, params, l_max):
    B_, L_, D_ = x.shape
    mean = jnp.mean(x, axis=-1, keepdims=True)
    var = jnp.mean((x - mean) ** 2, axis=-1, keepdims=True)
    xn = (x - mean) / jnp.sqrt(var + LN_EPS) * params["ln_gamma"] + params["ln_beta"]

    ssm_k = compute_ssm_kernel(params, l_max)                            # (D, l_max)
    xt = jnp.transpose(xn, (0, 2, 1))                                    # (B, D, L)
    kf = jnp.fft.rfft(ssm_k, n=2 * l_max)
    xf = jnp.fft.rfft(xt, n=2 * l_max)
    y = jnp.fft.irfft(xf * kf, n=2 * l_max)[..., :L_]
    y = y + params["D"][None, :, None] * xt
    y = jnp.transpose(y, (0, 2, 1))                                      # (B, L, D)

    z = jnp.dot(y, params["W"], precision=HIGHEST) + params["b"]
    a, g = z[..., :D_], z[..., D_:]
    return x + a * jax.nn.sigmoid(g)


# ----------------------------- main -----------------------------

if __name__ == "__main__":
    d_model, n, l_max = 32, 8, 16
    batch = 2
    L = l_max

    key = jax.random.PRNGKey(0)
    keys = jax.random.split(key, 8)

    params = {
        "L": 0.5 * jnp.ones((d_model, n), jnp.float32),
        "P_left": 0.01 * jax.random.normal(keys[0], (d_model, n, 2), jnp.float32),
        "P_right": 0.01 * jax.random.normal(keys[1], (d_model, 2, n), jnp.float32),
        "B": jax.random.normal(keys[2], (d_model, n), jnp.float32) / math.sqrt(n),
        "C": jax.random.normal(keys[3], (d_model, n), jnp.float32) / math.sqrt(n),
        "D": jnp.ones((d_model,), jnp.float32),
        "log_dt": jnp.log(0.1) * jnp.ones((d_model, 1), jnp.float32),
        "ln_gamma": jnp.ones((d_model,), jnp.float32),
        "ln_beta": jnp.zeros((d_model,), jnp.float32),
    }
    xavier_bound = math.sqrt(6.0 / (d_model + 2 * d_model))
    params["W"] = jax.random.uniform(keys[4], (d_model, 2 * d_model), jnp.float32,
                                     minval=-xavier_bound, maxval=xavier_bound)
    bias_bound = 1.0 / math.sqrt(d_model)
    params["b"] = jax.random.uniform(keys[5], (2 * d_model,), jnp.float32,
                                     minval=-bias_bound, maxval=bias_bound)

    x = jax.random.normal(keys[6], (batch, L, d_model), jnp.float32)

    y = s4block2d_forward(x, params, l_max)
    y = jax.block_until_ready(y)

    y_ref = s4block2d_reference(x, params, l_max)
    y_ref = jax.block_until_ready(y_ref)

    assert y.shape == (batch, L, d_model)
    assert jnp.allclose(y, y_ref, rtol=2e-3, atol=2e-3), (
        "mismatch vs pure-JAX FFT reference: max abs err = "
        f"{float(jnp.max(jnp.abs(y - y_ref)))}"
    )
    print("KERNEL_OK")
</pallas_src>

<mosaic_0001>
module attributes {stable_mosaic.version = 11 : i64} {
  func.func @s4_block_kernel(%arg0: i32, %arg1: memref<1x16x32xf32, #tpu.memory_space<vmem>>, %arg2: memref<1x32xf32, #tpu.memory_space<vmem>>, %arg3: memref<1x32xf32, #tpu.memory_space<vmem>>, %arg4: memref<32x16xf32, #tpu.memory_space<vmem>>, %arg5: memref<32x1xf32, #tpu.memory_space<vmem>>, %arg6: memref<32x64xf32, #tpu.memory_space<vmem>>, %arg7: memref<1x64xf32, #tpu.memory_space<vmem>>, %arg8: memref<1x16x32xf32, #tpu.memory_space<vmem>>) attributes {dimension_semantics = [#tpu.dimension_semantics<parallel>], iteration_bounds = array<i64: 2>, scalar_prefetch = 0 : i64, scratch_operands = 0 : i64, tpu.core_type = #tpu.core_type<tc>, window_params = [{transform_indices = @transform_0, window_bounds = array<i64: 1, 16, 32>}, {pipeline_mode = #tpu.pipeline_mode<synchronous>, transform_indices = @transform_1, window_bounds = array<i64: 1, 32>}, {pipeline_mode = #tpu.pipeline_mode<synchronous>, transform_indices = @transform_2, window_bounds = array<i64: 1, 32>}, {pipeline_mode = #tpu.pipeline_mode<synchronous>, transform_indices = @transform_3, window_bounds = array<i64: 32, 16>}, {pipeline_mode = #tpu.pipeline_mode<synchronous>, transform_indices = @transform_4, window_bounds = array<i64: 32, 1>}, {pipeline_mode = #tpu.pipeline_mode<synchronous>, transform_indices = @transform_5, window_bounds = array<i64: 32, 64>}, {pipeline_mode = #tpu.pipeline_mode<synchronous>, transform_indices = @transform_6, window_bounds = array<i64: 1, 64>}, {transform_indices = @transform_7, window_bounds = array<i64: 1, 16, 32>}]} {
    %c0 = arith.constant 0 : index
    %c0_0 = arith.constant 0 : index
    %c0_1 = arith.constant 0 : index
    %0 = vector.load %arg1[%c0, %c0_0, %c0_1] : memref<1x16x32xf32, #tpu.memory_space<vmem>>, vector<1x16x32xf32>
    %1 = vector.shape_cast %0 : vector<1x16x32xf32> to vector<16x32xf32>
    %cst = arith.constant dense<0.000000e+00> : vector<16xf32>
    %2 = vector.multi_reduction <add>, %1, %cst [1] : vector<16x32xf32> to vector<16xf32>
    %3 = vector.shape_cast %2 : vector<16xf32> to vector<16x1xf32>
    %cst_2 = arith.constant 3.200000e+01 : f32
    %4 = vector.broadcast %cst_2 : f32 to vector<16x1xf32>
    %5 = arith.divf %3, %4 : vector<16x1xf32>
    %6 = vector.broadcast %5 : vector<16x1xf32> to vector<16x32xf32>
    %7 = arith.subf %1, %6 : vector<16x32xf32>
    %8 = arith.mulf %7, %7 : vector<16x32xf32>
    %cst_3 = arith.constant dense<0.000000e+00> : vector<16xf32>
    %9 = vector.multi_reduction <add>, %8, %cst_3 [1] : vector<16x32xf32> to vector<16xf32>
    %10 = vector.shape_cast %9 : vector<16xf32> to vector<16x1xf32>
    %cst_4 = arith.constant 3.200000e+01 : f32
    %11 = vector.broadcast %cst_4 : f32 to vector<16x1xf32>
    %12 = arith.divf %10, %11 : vector<16x1xf32>
    %13 = vector.broadcast %5 : vector<16x1xf32> to vector<16x32xf32>
    %14 = arith.subf %1, %13 : vector<16x32xf32>
    %cst_5 = arith.constant 9.99999974E-6 : f32
    %15 = vector.broadcast %cst_5 : f32 to vector<16x1xf32>
    %16 = arith.addf %12, %15 : vector<16x1xf32>
    %17 = math.rsqrt %16 : vector<16x1xf32>
    %18 = vector.broadcast %17 : vector<16x1xf32> to vector<16x32xf32>
    %19 = arith.mulf %14, %18 : vector<16x32xf32>
    %c0_6 = arith.constant 0 : index
    %c0_7 = arith.constant 0 : index
    %20 = vector.load %arg2[%c0_6, %c0_7] : memref<1x32xf32, #tpu.memory_space<vmem>>, vector<1x32xf32>
    %21 = vector.broadcast %20 : vector<1x32xf32> to vector<16x32xf32>
    %22 = arith.mulf %19, %21 : vector<16x32xf32>
    %c0_8 = arith.constant 0 : index
    %c0_9 = arith.constant 0 : index
    %23 = vector.load %arg3[%c0_8, %c0_9] : memref<1x32xf32, #tpu.memory_space<vmem>>, vector<1x32xf32>
    %24 = vector.broadcast %23 : vector<1x32xf32> to vector<16x32xf32>
    %25 = arith.addf %22, %24 : vector<16x32xf32>
    %26 = tpu.transpose %25, [1, 0] : vector<16x32xf32> -> vector<32x16xf32>
    %27 = tpu.iota {dimensions = array<i32: 1>} : vector<32x16xi32>
    %c0_10 = arith.constant 0 : index
    %c0_11 = arith.constant 0 : index
    %28 = vector.load %arg4[%c0_10, %c0_11] : memref<32x16xf32, #tpu.memory_space<vmem>>, vector<32x16xf32>
    %29 = vector.extract_strided_slice %28 {offsets = [0, 0], sizes = [32, 1], strides = [1, 1]} : vector<32x16xf32> to vector<32x1xf32>
    %30 = vector.broadcast %29 : vector<32x1xf32> to vector<32x16xf32>
    %31 = arith.mulf %30, %26 : vector<32x16xf32>
    %c1_i32 = arith.constant 1 : i32
    %32 = tpu.dynamic_rotate %26 by %c1_i32 dim 1 : vector<32x16xf32>, i32 -> vector<32x16xf32>
    %33 = vector.extract_strided_slice %28 {offsets = [0, 1], sizes = [32, 1], strides = [1, 1]} : vector<32x16xf32> to vector<32x1xf32>
    %c1_i32_12 = arith.constant 1 : i32
    %34 = vector.broadcast %c1_i32_12 : i32 to vector<32x16xi32>
    %35 = arith.cmpi sge, %27, %34 : vector<32x16xi32>
    %cst_13 = arith.constant 0.000000e+00 : f32
    %36 = vector.broadcast %cst_13 : f32 to vector<32x16xf32>
    %37 = arith.select %35, %32, %36 : vector<32x16xi1>, vector<32x16xf32>
    %38 = vector.broadcast %33 : vector<32x1xf32> to vector<32x16xf32>
    %39 = arith.mulf %38, %37 : vector<32x16xf32>
    %40 = arith.addf %31, %39 : vector<32x16xf32>
    %c2_i32 = arith.constant 2 : i32
    %41 = tpu.dynamic_rotate %26 by %c2_i32 dim 1 : vector<32x16xf32>, i32 -> vector<32x16xf32>
    %42 = vector.extract_strided_slice %28 {offsets = [0, 2], sizes = [32, 1], strides = [1, 1]} : vector<32x16xf32> to vector<32x1xf32>
    %c2_i32_14 = arith.constant 2 : i32
    %43 = vector.broadcast %c2_i32_14 : i32 to vector<32x16xi32>
    %44 = arith.cmpi sge, %27, %43 : vector<32x16xi32>
    %cst_15 = arith.constant 0.000000e+00 : f32
    %45 = vector.broadcast %cst_15 : f32 to vector<32x16xf32>
    %46 = arith.select %44, %41, %45 : vector<32x16xi1>, vector<32x16xf32>
    %47 = vector.broadcast %42 : vector<32x1xf32> to vector<32x16xf32>
    %48 = arith.mulf %47, %46 : vector<32x16xf32>
    %49 = arith.addf %40, %48 : vector<32x16xf32>
    %c3_i32 = arith.constant 3 : i32
    %50 = tpu.dynamic_rotate %26 by %c3_i32 dim 1 : vector<32x16xf32>, i32 -> vector<32x16xf32>
    %51 = vector.extract_strided_slice %28 {offsets = [0, 3], sizes = [32, 1], strides = [1, 1]} : vector<32x16xf32> to vector<32x1xf32>
    %c3_i32_16 = arith.constant 3 : i32
    %52 = vector.broadcast %c3_i32_16 : i32 to vector<32x16xi32>
    %53 = arith.cmpi sge, %27, %52 : vector<32x16xi32>
    %cst_17 = arith.constant 0.000000e+00 : f32
    %54 = vector.broadcast %cst_17 : f32 to vector<32x16xf32>
    %55 = arith.select %53, %50, %54 : vector<32x16xi1>, vector<32x16xf32>
    %56 = vector.broadcast %51 : vector<32x1xf32> to vector<32x16xf32>
    %57 = arith.mulf %56, %55 : vector<32x16xf32>
    %58 = arith.addf %49, %57 : vector<32x16xf32>
    %c4_i32 = arith.constant 4 : i32
    %59 = tpu.dynamic_rotate %26 by %c4_i32 dim 1 : vector<32x16xf32>, i32 -> vector<32x16xf32>
    %60 = vector.extract_strided_slice %28 {offsets = [0, 4], sizes = [32, 1], strides = [1, 1]} : vector<32x16xf32> to vector<32x1xf32>
    %c4_i32_18 = arith.constant 4 : i32
    %61 = vector.broadcast %c4_i32_18 : i32 to vector<32x16xi32>
    %62 = arith.cmpi sge, %27, %61 : vector<32x16xi32>
    %cst_19 = arith.constant 0.000000e+00 : f32
    %63 = vector.broadcast %cst_19 : f32 to vector<32x16xf32>
    %64 = arith.select %62, %59, %63 : vector<32x16xi1>, vector<32x16xf32>
    %65 = vector.broadcast %60 : vector<32x1xf32> to vector<32x16xf32>
    %66 = arith.mulf %65, %64 : vector<32x16xf32>
    %67 = arith.addf %58, %66 : vector<32x16xf32>
    %c5_i32 = arith.constant 5 : i32
    %68 = tpu.dynamic_rotate %26 by %c5_i32 dim 1 : vector<32x16xf32>, i32 -> vector<32x16xf32>
    %69 = vector.extract_strided_slice %28 {offsets = [0, 5], sizes = [32, 1], strides = [1, 1]} : vector<32x16xf32> to vector<32x1xf32>
    %c5_i32_20 = arith.constant 5 : i32
    %70 = vector.broadcast %c5_i32_20 : i32 to vector<32x16xi32>
    %71 = arith.cmpi sge, %27, %70 : vector<32x16xi32>
    %cst_21 = arith.constant 0.000000e+00 : f32
    %72 = vector.broadcast %cst_21 : f32 to vector<32x16xf32>
    %73 = arith.select %71, %68, %72 : vector<32x16xi1>, vector<32x16xf32>
    %74 = vector.broadcast %69 : vector<32x1xf32> to vector<32x16xf32>
    %75 = arith.mulf %74, %73 : vector<32x16xf32>
    %76 = arith.addf %67, %75 : vector<32x16xf32>
    %c6_i32 = arith.constant 6 : i32
    %77 = tpu.dynamic_rotate %26 by %c6_i32 dim 1 : vector<32x16xf32>, i32 -> vector<32x16xf32>
    %78 = vector.extract_strided_slice %28 {offsets = [0, 6], sizes = [32, 1], strides = [1, 1]} : vector<32x16xf32> to vector<32x1xf32>
    %c6_i32_22 = arith.constant 6 : i32
    %79 = vector.broadcast %c6_i32_22 : i32 to vector<32x16xi32>
    %80 = arith.cmpi sge, %27, %79 : vector<32x16xi32>
    %cst_23 = arith.constant 0.000000e+00 : f32
    %81 = vector.broadcast %cst_23 : f32 to vector<32x16xf32>
    %82 = arith.select %80, %77, %81 : vector<32x16xi1>, vector<32x16xf32>
    %83 = vector.broadcast %78 : vector<32x1xf32> to vector<32x16xf32>
    %84 = arith.mulf %83, %82 : vector<32x16xf32>
    %85 = arith.addf %76, %84 : vector<32x16xf32>
    %c7_i32 = arith.constant 7 : i32
    %86 = tpu.dynamic_rotate %26 by %c7_i32 dim 1 : vector<32x16xf32>, i32 -> vector<32x16xf32>
    %87 = vector.extract_strided_slice %28 {offsets = [0, 7], sizes = [32, 1], strides = [1, 1]} : vector<32x16xf32> to vector<32x1xf32>
    %c7_i32_24 = arith.constant 7 : i32
    %88 = vector.broadcast %c7_i32_24 : i32 to vector<32x16xi32>
    %89 = arith.cmpi sge, %27, %88 : vector<32x16xi32>
    %cst_25 = arith.constant 0.000000e+00 : f32
    %90 = vector.broadcast %cst_25 : f32 to vector<32x16xf32>
    %91 = arith.select %89, %86, %90 : vector<32x16xi1>, vector<32x16xf32>
    %92 = vector.broadcast %87 : vector<32x1xf32> to vector<32x16xf32>
    %93 = arith.mulf %92, %91 : vector<32x16xf32>
    %94 = arith.addf %85, %93 : vector<32x16xf32>
    %c8_i32 = arith.constant 8 : i32
    %95 = tpu.dynamic_rotate %26 by %c8_i32 dim 1 : vector<32x16xf32>, i32 -> vector<32x16xf32>
    %96 = vector.extract_strided_slice %28 {offsets = [0, 8], sizes = [32, 1], strides = [1, 1]} : vector<32x16xf32> to vector<32x1xf32>
    %c8_i32_26 = arith.constant 8 : i32
    %97 = vector.broadcast %c8_i32_26 : i32 to vector<32x16xi32>
    %98 = arith.cmpi sge, %27, %97 : vector<32x16xi32>
    %cst_27 = arith.constant 0.000000e+00 : f32
    %99 = vector.broadcast %cst_27 : f32 to vector<32x16xf32>
    %100 = arith.select %98, %95, %99 : vector<32x16xi1>, vector<32x16xf32>
    %101 = vector.broadcast %96 : vector<32x1xf32> to vector<32x16xf32>
    %102 = arith.mulf %101, %100 : vector<32x16xf32>
    %103 = arith.addf %94, %102 : vector<32x16xf32>
    %c9_i32 = arith.constant 9 : i32
    %104 = tpu.dynamic_rotate %26 by %c9_i32 dim 1 : vector<32x16xf32>, i32 -> vector<32x16xf32>
    %105 = vector.extract_strided_slice %28 {offsets = [0, 9], sizes = [32, 1], strides = [1, 1]} : vector<32x16xf32> to vector<32x1xf32>
    %c9_i32_28 = arith.constant 9 : i32
    %106 = vector.broadcast %c9_i32_28 : i32 to vector<32x16xi32>
    %107 = arith.cmpi sge, %27, %106 : vector<32x16xi32>
    %cst_29 = arith.constant 0.000000e+00 : f32
    %108 = vector.broadcast %cst_29 : f32 to vector<32x16xf32>
    %109 = arith.select %107, %104, %108 : vector<32x16xi1>, vector<32x16xf32>
    %110 = vector.broadcast %105 : vector<32x1xf32> to vector<32x16xf32>
    %111 = arith.mulf %110, %109 : vector<32x16xf32>
    %112 = arith.addf %103, %111 : vector<32x16xf32>
    %c10_i32 = arith.constant 10 : i32
    %113 = tpu.dynamic_rotate %26 by %c10_i32 dim 1 : vector<32x16xf32>, i32 -> vector<32x16xf32>
    %114 = vector.extract_strided_slice %28 {offsets = [0, 10], sizes = [32, 1], strides = [1, 1]} : vector<32x16xf32> to vector<32x1xf32>
    %c10_i32_30 = arith.constant 10 : i32
    %115 = vector.broadcast %c10_i32_30 : i32 to vector<32x16xi32>
    %116 = arith.cmpi sge, %27, %115 : vector<32x16xi32>
    %cst_31 = arith.constant 0.000000e+00 : f32
    %117 = vector.broadcast %cst_31 : f32 to vector<32x16xf32>
    %118 = arith.select %116, %113, %117 : vector<32x16xi1>, vector<32x16xf32>
    %119 = vector.broadcast %114 : vector<32x1xf32> to vector<32x16xf32>
    %120 = arith.mulf %119, %118 : vector<32x16xf32>
    %121 = arith.addf %112, %120 : vector<32x16xf32>
    %c11_i32 = arith.constant 11 : i32
    %122 = tpu.dynamic_rotate %26 by %c11_i32 dim 1 : vector<32x16xf32>, i32 -> vector<32x16xf32>
    %123 = vector.extract_strided_slice %28 {offsets = [0, 11], sizes = [32, 1], strides = [1, 1]} : vector<32x16xf32> to vector<32x1xf32>
    %c11_i32_32 = arith.constant 11 : i32
    %124 = vector.broadcast %c11_i32_32 : i32 to vector<32x16xi32>
    %125 = arith.cmpi sge, %27, %124 : vector<32x16xi32>
    %cst_33 = arith.constant 0.000000e+00 : f32
    %126 = vector.broadcast %cst_33 : f32 to vector<32x16xf32>
    %127 = arith.select %125, %122, %126 : vector<32x16xi1>, vector<32x16xf32>
    %128 = vector.broadcast %123 : vector<32x1xf32> to vector<32x16xf32>
    %129 = arith.mulf %128, %127 : vector<32x16xf32>
    %130 = arith.addf %121, %129 : vector<32x16xf32>
    %c12_i32 = arith.constant 12 : i32
    %131 = tpu.dynamic_rotate %26 by %c12_i32 dim 1 : vector<32x16xf32>, i32 -> vector<32x16xf32>
    %132 = vector.extract_strided_slice %28 {offsets = [0, 12], sizes = [32, 1], strides = [1, 1]} : vector<32x16xf32> to vector<32x1xf32>
    %c12_i32_34 = arith.constant 12 : i32
    %133 = vector.broadcast %c12_i32_34 : i32 to vector<32x16xi32>
    %134 = arith.cmpi sge, %27, %133 : vector<32x16xi32>
    %cst_35 = arith.constant 0.000000e+00 : f32
    %135 = vector.broadcast %cst_35 : f32 to vector<32x16xf32>
    %136 = arith.select %134, %131, %135 : vector<32x16xi1>, vector<32x16xf32>
    %137 = vector.broadcast %132 : vector<32x1xf32> to vector<32x16xf32>
    %138 = arith.mulf %137, %136 : vector<32x16xf32>
    %139 = arith.addf %130, %138 : vector<32x16xf32>
    %c13_i32 = arith.constant 13 : i32
    %140 = tpu.dynamic_rotate %26 by %c13_i32 dim 1 : vector<32x16xf32>, i32 -> vector<32x16xf32>
    %141 = vector.extract_strided_slice %28 {offsets = [0, 13], sizes = [32, 1], strides = [1, 1]} : vector<32x16xf32> to vector<32x1xf32>
    %c13_i32_36 = arith.constant 13 : i32
    %142 = vector.broadcast %c13_i32_36 : i32 to vector<32x16xi32>
    %143 = arith.cmpi sge, %27, %142 : vector<32x16xi32>
    %cst_37 = arith.constant 0.000000e+00 : f32
    %144 = vector.broadcast %cst_37 : f32 to vector<32x16xf32>
    %145 = arith.select %143, %140, %144 : vector<32x16xi1>, vector<32x16xf32>
    %146 = vector.broadcast %141 : vector<32x1xf32> to vector<32x16xf32>
    %147 = arith.mulf %146, %145 : vector<32x16xf32>
    %148 = arith.addf %139, %147 : vector<32x16xf32>
    %c14_i32 = arith.constant 14 : i32
    %149 = tpu.dynamic_rotate %26 by %c14_i32 dim 1 : vector<32x16xf32>, i32 -> vector<32x16xf32>
    %150 = vector.extract_strided_slice %28 {offsets = [0, 14], sizes = [32, 1], strides = [1, 1]} : vector<32x16xf32> to vector<32x1xf32>
    %c14_i32_38 = arith.constant 14 : i32
    %151 = vector.broadcast %c14_i32_38 : i32 to vector<32x16xi32>
    %152 = arith.cmpi sge, %27, %151 : vector<32x16xi32>
    %cst_39 = arith.constant 0.000000e+00 : f32
    %153 = vector.broadcast %cst_39 : f32 to vector<32x16xf32>
    %154 = arith.select %152, %149, %153 : vector<32x16xi1>, vector<32x16xf32>
    %155 = vector.broadcast %150 : vector<32x1xf32> to vector<32x16xf32>
    %156 = arith.mulf %155, %154 : vector<32x16xf32>
    %157 = arith.addf %148, %156 : vector<32x16xf32>
    %c15_i32 = arith.constant 15 : i32
    %158 = tpu.dynamic_rotate %26 by %c15_i32 dim 1 : vector<32x16xf32>, i32 -> vector<32x16xf32>
    %159 = vector.extract_strided_slice %28 {offsets = [0, 15], sizes = [32, 1], strides = [1, 1]} : vector<32x16xf32> to vector<32x1xf32>
    %c15_i32_40 = arith.constant 15 : i32
    %160 = vector.broadcast %c15_i32_40 : i32 to vector<32x16xi32>
    %161 = arith.cmpi sge, %27, %160 : vector<32x16xi32>
    %cst_41 = arith.constant 0.000000e+00 : f32
    %162 = vector.broadcast %cst_41 : f32 to vector<32x16xf32>
    %163 = arith.select %161, %158, %162 : vector<32x16xi1>, vector<32x16xf32>
    %164 = vector.broadcast %159 : vector<32x1xf32> to vector<32x16xf32>
    %165 = arith.mulf %164, %163 : vector<32x16xf32>
    %166 = arith.addf %157, %165 : vector<32x16xf32>
    %c0_42 = arith.constant 0 : index
    %c0_43 = arith.constant 0 : index
    %167 = vector.load %arg5[%c0_42, %c0_43] : memref<32x1xf32, #tpu.memory_space<vmem>>, vector<32x1xf32>
    %168 = vector.broadcast %167 : vector<32x1xf32> to vector<32x16xf32>
    %169 = arith.mulf %168, %26 : vector<32x16xf32>
    %170 = arith.addf %166, %169 : vector<32x16xf32>
    %171 = tpu.transpose %170, [1, 0] : vector<32x16xf32> -> vector<16x32xf32>
    %c0_44 = arith.constant 0 : index
    %c0_45 = arith.constant 0 : index
    %172 = vector.load %arg6[%c0_44, %c0_45] : memref<32x64xf32, #tpu.memory_space<vmem>>, vector<32x64xf32>
    %cst_46 = arith.constant dense<0.000000e+00> : vector<16x64xf32>
    %173 = tpu.matmul %171, %172, %cst_46 {dimension_numbers = #tpu.dot_dimension_numbers<[1], [0], [0], [1], [0, 0, 1, 1], [], []>, precision = #tpu.contract_precision<fp32>} : vector<16x32xf32>, vector<32x64xf32>, vector<16x64xf32> -> vector<16x64xf32>
    %c0_47 = arith.constant 0 : index
    %c0_48 = arith.constant 0 : index
    %174 = vector.load %arg7[%c0_47, %c0_48] : memref<1x64xf32, #tpu.memory_space<vmem>>, vector<1x64xf32>
    %175 = vector.broadcast %174 : vector<1x64xf32> to vector<16x64xf32>
    %176 = arith.addf %173, %175 : vector<16x64xf32>
    %177 = vector.extract_strided_slice %176 {offsets = [0, 0], sizes = [16, 32], strides = [1, 1]} : vector<16x64xf32> to vector<16x32xf32>
    %178 = vector.extract_strided_slice %176 {offsets = [0, 32], sizes = [16, 32], strides = [1, 1]} : vector<16x64xf32> to vector<16x32xf32>
    %179 = arith.negf %178 : vector<16x32xf32>
    %180 = math.exp %179 : vector<16x32xf32>
    %cst_49 = arith.constant 1.000000e+00 : f32
    %181 = vector.broadcast %cst_49 : f32 to vector<16x32xf32>
    %182 = arith.addf %181, %180 : vector<16x32xf32>
    %183 = arith.divf %181, %182 : vector<16x32xf32>
    %184 = arith.mulf %177, %183 : vector<16x32xf32>
    %185 = arith.addf %1, %184 : vector<16x32xf32>
    %c0_50 = arith.constant 0 : index
    %c0_51 = arith.constant 0 : index
    %c0_52 = arith.constant 0 : index
    %186 = vector.load %arg8[%c0_50, %c0_51, %c0_52] : memref<1x16x32xf32, #tpu.memory_space<vmem>>, vector<1x16x32xf32>
    %187 = vector.shape_cast %186 : vector<1x16x32xf32> to vector<16x32xf32>
    %188 = vector.shape_cast %185 : vector<16x32xf32> to vector<1x16x32xf32>
    tpu.vector_store %arg8[%c0_50, %c0_51, %c0_52], %188 {strides = array<i32>} : memref<1x16x32xf32, #tpu.memory_space<vmem>>, vector<1x16x32xf32>,
    return
  }
  func.func @transform_0(%arg0: i32) -> (i32, i32, i32) {
    %c0_i32 = arith.constant 0 : i32
    %c0_i32_0 = arith.constant 0 : i32
    %c0_i32_1 = arith.constant 0 : i32
    return %arg0, %c0_i32, %c0_i32_0 : i32, i32, i32
  }
  func.func @transform_1(%arg0: i32) -> (i32, i32) {
    %c0_i32 = arith.constant 0 : i32
    %c0_i32_0 = arith.constant 0 : i32
    %c0_i32_1 = arith.constant 0 : i32
    return %c0_i32, %c0_i32_0 : i32, i32
  }
  func.func @transform_2(%arg0: i32) -> (i32, i32) {
    %c0_i32 = arith.constant 0 : i32
    %c0_i32_0 = arith.constant 0 : i32
    %c0_i32_1 = arith.constant 0 : i32
    return %c0_i32, %c0_i32_0 : i32, i32
  }
  func.func @transform_3(%arg0: i32) -> (i32, i32) {
    %c0_i32 = arith.constant 0 : i32
    %c0_i32_0 = arith.constant 0 : i32
    %c0_i32_1 = arith.constant 0 : i32
    return %c0_i32, %c0_i32_0 : i32, i32
  }
  func.func @transform_4(%arg0: i32) -> (i32, i32) {
    %c0_i32 = arith.constant 0 : i32
    %c0_i32_0 = arith.constant 0 : i32
    %c0_i32_1 = arith.constant 0 : i32
    return %c0_i32, %c0_i32_0 : i32, i32
  }
  func.func @transform_5(%arg0: i32) -> (i32, i32) {
    %c0_i32 = arith.constant 0 : i32
    %c0_i32_0 = arith.constant 0 : i32
    %c0_i32_1 = arith.constant 0 : i32
    return %c0_i32, %c0_i32_0 : i32, i32
  }
  func.func @transform_6(%arg0: i32) -> (i32, i32) {
    %c0_i32 = arith.constant 0 : i32
    %c0_i32_0 = arith.constant 0 : i32
    %c0_i32_1 = arith.constant 0 : i32
    return %c0_i32, %c0_i32_0 : i32, i32
  }
  func.func @transform_7(%arg0: i32) -> (i32, i32, i32) {
    %c0_i32 = arith.constant 0 : i32
    %c0_i32_0 = arith.constant 0 : i32
    %c0_i32_1 = arith.constant 0 : i32
    return %arg0, %c0_i32, %c0_i32_0 : i32, i32, i32
  }
}

</mosaic_0001>

<bundles_post_ra>
// kernel: tpu_custom_call.1
= control target key start
LH: loop header
LB: loop body
LE: loop exit
PB: predicated region body
PF: predicated region fallthrough
CT: control target
= control target key end

     0   :  { %12 = vsyncpa [#allocation3], 0  ;;  %s3030_s0 = inlined_call_operand.vmem [shape: f32[2,16,32], index: 0, kind: input, shape index: {}]   ;;  %s3031_s1 = inlined_call_operand.vmem [shape: f32[1,32], index: 1, kind: input, shape index: {}]   ;;  %s3032_s2 = inlined_call_operand.vmem [shape: f32[1,32], index: 2, kind: input, shape index: {}]   ;;  %s3033_s3 = inlined_call_operand.vmem [shape: f32[32,16], index: 3, kind: input, shape index: {}]   ;;  %s3034_s4 = inlined_call_operand.vmem [shape: f32[32,1], index: 4, kind: input, shape index: {}]   ;;  %s3035_s5 = inlined_call_operand.vmem [shape: f32[32,64], index: 5, kind: input, shape index: {}]   ;;  %s3036_s6 = inlined_call_operand.vmem [shape: f32[1,64], index: 6, kind: input, shape index: {}]   ;;  %s3037_s7 = inlined_call_operand.hbm [shape: f32[2,16,32], index: 7, kind: output, shape index: {}]  }
   0x1   :  { %14 = vsyncpa [#allocation3 + $0x1], 0  ;;  %s2198_s24 = smov 0   ;;  %s2200_s25 = smov 0  }
   0x2   :  { %s2202_s26 = smov 0   ;;  %s2204_s27 = smov 0  }
   0x3 LB: > { %s2219_s28 = sadd.s32 4294967295, %s2120_s27   ;;  %s1742_s29 = sadd.s32 4294967294, %s2120_s27   ;;  %s2120_s27 = sphi %s2204_s27, %s3144_s27   ;;  %s2116_s26 = sphi %s2202_s26, %s3143_s26   ;;  %s2112_s25 = sphi %s2200_s25, %s3142_s25   ;;  %s2108_s24 = sphi %s2198_s24, %s3141_s24  }
   0x4   : > { %s2223_s30 = sadd.s32 1, %s2120_s27   ;;  %s179_s8 = sadd.s32 1, %s2116_s26 }
   0x5   : > { %s176_s9 = ssub.s32 %s2120_s27, %s2223_s30  ;;  %p189_p0 = scmp.ne.s32.totalorder %s2116_s26, %s2112_s25 }
   0x6   : > { %p177_p1 = scmp.eq.s32.totalorder %s176_s9, 0  ;;  %p190_p2 = scmp.eq.s32.totalorder %s2219_s28, 1 }
   0x7   : > { %p195_p3 = scmp.ne.s32.totalorder %s2112_s25, %s2108_s24  ;;  %p196_p4 = scmp.eq.s32.totalorder %s1742_s29, 1 }
   0x8   : > { %s2234_s10 = scalar_select %p177_p1, %s2116_s26, %s179_s8  }
   0x9   : > { %p2236_p5 = por %p190_p2, %p189_p0  ;;  %p2240_p6 = por %p196_p4, %p195_p3 }
   0xa   : > { %p1745_p7 = scmp.ge.s32.totalorder %s2120_s27, 1  ;;  %p240_p8 = scmp.lt.s32.totalorder %s2120_s27, 3 }
   0xc   : > { %p241_p9 = pnand %p1745_p7, %p240_p8 }
   0xe   : > { %244 = sbr.rel (%p241_p9) target bundleno = 1546 (0x60a), region = 48 }
  0x15   : > { %v2249_v0 = vld [vmem:[%s3033_s3] sm:$0xff]  ;;  %p272_p10 = scmp.lt.s32.totalorder %s2219_s28, 1  ;;  %v3038_v1 = vmov 0   ;;  %v2123_v2 = vmov 1   ;;  %v2258_v3 = vld [vmem:[%s3033_s3 + $0x8] sm:$0xff]  ;;  %vm279_vm0 = vcmask 261120  }
  0x16   : > { %1998 = vset.pattern.permute.xlu1 %v3038_v1  ;;  %1999 = vset.pattern.permute.xlu0 %v2123_v2  ;;  %v2124_v8 = vmov 2   ;;  %v2281_v9 = vld [vmem:[%s3033_s3 + $0x10] sm:$0xff]  ;;  %v2125_v10 = vmov 3   ;;  %v2292_v11 = vld [vmem:[%s3033_s3 + $0x18] sm:$0xff]  ;;  %v2126_v12 = vmov 5   ;;  %v2127_v13 = vmov 4  }
  0x17   : > { %365 = vperm.xlu1 %1998, %v2249_v0   ;;  %s273_s15 = scalar_select %p272_p10, %s2219_s28, 1  ;;  %v2128_v14 = vmov 6   ;;  %v2129_v15 = vmov 7   ;;  %v2130_v16 = vmov 8   ;;  %v2131_v17 = vmov 9   ;;  %v1032_v51 = vld [vmem:[%s3034_s4 + $0x8] sm:$0xff] }
  0x18   : > { %v2132_v18 = vmov 10   ;;  %v2133_v19 = vmov 11   ;;  %v2134_v41 = vmov 12   ;;  %v2135_v44 = vmov 13   ;;  %s2139_s19 = smov 115   ;;  %s2140_s20 = smov 113  }
  0x19   : > { %s1759_s18 = sshll.u32 %s273_s15, 4  ;;  %v2136_v46 = vmov 14   ;;  %v2137_v49 = vmov 15   ;;  %vm387_vm1 = vcmask 1047680   ;;  %s3047_s22 = smov 117  }
  0x1a   : > { %s2263_s21 = scalar_lea.vmem %s3030_s0, %s1759_s18  ;;  %s2138_s18 = smov 16  }
  0x1b   : > { %370 = vperm.xlu1 %1998, %v2258_v3   ;;  %v2267_v4 = vld [vmem:[%s2263_s21] sm:$0xff]  ;;  %v2270_v5 = vld [vmem:[%s2263_s21 + $0x8] sm:$0xff]  ;;  %s2142_s23 = smov 114   ;;  %s2143_s29 = smov 116  }
  0x1c   : > { %v280_v6 = vsel %vm279_vm0, %v2267_v4, 0.0  ;;  %v283_v7 = vsel %vm279_vm0, %v2270_v5, 0.0  ;;  %s2144_s8 = smov 118   ;;  %s3039_s9 = smov 119  }
  0x1d   : > { %281 = vadd.xlane.f32.xlu0 %v280_v6  ;;  %s3041_s13 = smov 120   ;;  %s3049_s14 = smov 121  }
  0x1e   : > { %s2148_s15 = smov 122   ;;  %s3045_s16 = smov 123  }
  0x1f   : > { %2000 = vset.pattern.permute.xlu1 %v2123_v2  ;;  %s2150_s17 = smov 124  }
  0x20   : > { %438 = vperm.xlu1 %2000, %v2258_v3  }
  0x21   : > { %284 = vadd.xlane.f32.xlu0 %v283_v7 }
  0x24   : > { %2001 = vset.pattern.permute.xlu1 %v2124_v8 }
  0x25   : > { %475 = vperm.xlu1 %2001, %v2249_v0  }
  0x29   : > { %2002 = vset.pattern.permute.xlu1 %v3038_v1 }
  0x2a   : > { %375 = vperm.xlu1 %2002, %v2281_v9  }
  0x2e   : > { %2003 = vset.pattern.permute.xlu1 %v2123_v2 }
  0x2f   : > { %442 = vperm.xlu1 %2003, %v2281_v9  }
  0x33   : > { %2004 = vset.pattern.permute.xlu1 %v2124_v8 }
  0x34   : > { %479 = vperm.xlu1 %2004, %v2258_v3  }
  0x37   : > { %434 = vperm.xlu0 %1999, %v2249_v0  }
  0x38   : > { %2005 = vset.pattern.permute.xlu1 %v2125_v10 }
  0x39   : > { %516 = vperm.xlu1 %2005, %v2249_v0  }
  0x3b   : > { %2011 = vset.pattern.permute.xlu0 %v2124_v8 }
  0x3c   : > { %487 = vperm.xlu0 %2011, %v2292_v11  }
  0x3d   : > { %2006 = vset.pattern.permute.xlu1 %v3038_v1 }
  0x3e   : > { %380 = vperm.xlu1 %2006, %v2292_v11  }
  0x40   : > { %2014 = vset.pattern.permute.xlu0 %v2126_v12 }
  0x41   : > { %598 = vperm.xlu0 %2014, %v2249_v0  }
  0x42   : > { %2007 = vset.pattern.permute.xlu1 %v2123_v2 }
  0x43   : > { %446 = vperm.xlu1 %2007, %v2292_v11  }
  0x45   : > { %2016 = vset.pattern.permute.xlu0 %v2127_v13 }
  0x46   : > { %565 = vperm.xlu0 %2016, %v2281_v9  }
  0x47   : > { %2008 = vset.pattern.permute.xlu1 %v2124_v8  ;;  %v1749_v8 = vld [vmem:[%s3031_s1] ss:$0 sm:$0xff] }
  0x48   : > { %483 = vperm.xlu1 %2008, %v2281_v9  }
  0x4a   : > { %569 = vperm.xlu0 %2016, %v2292_v11  }
  0x4c   : > { %2009 = vset.pattern.permute.xlu1 %v2125_v10 }
  0x4d   : > { %520 = vperm.xlu1 %2009, %v2258_v3  }
  0x4e   : > { %2020 = vset.pattern.permute.xlu0 %v2128_v14 }
  0x4f   : > { %643 = vperm.xlu0 %2020, %v2258_v3  }
  0x51   : > { %2010 = vset.pattern.permute.xlu1 %v2127_v13 }
  0x52   : > { %557 = vperm.xlu1 %2010, %v2249_v0  }
  0x53   : > { %647 = vperm.xlu0 %2020, %v2281_v9  }
  0x56   : > { %2012 = vset.pattern.permute.xlu1 %v2125_v10 }
  0x57   : > { %524 = vperm.xlu1 %2012, %v2281_v9   ;;  %651 = vperm.xlu0 %2020, %v2292_v11  }
  0x5b   : > { %2013 = vset.pattern.permute.xlu1 %v2127_v13  ;;  %2025 = vset.pattern.permute.xlu0 %v2129_v15 }
  0x5c   : > { %561 = vperm.xlu1 %2013, %v2258_v3   ;;  %692 = vperm.xlu0 %2025, %v2292_v11  }
  0x60   : > { %2015 = vset.pattern.permute.xlu1 %v2125_v10  ;;  %2026 = vset.pattern.permute.xlu0 %v2130_v16  ;;  %v1750_v10 = vld [vmem:[%s3032_s2] ss:$0 sm:$0xff] }
  0x61   : > { %528 = vperm.xlu1 %2015, %v2292_v11   ;;  %721 = vperm.xlu0 %2026, %v2249_v0  }
  0x65   : > { %2017 = vset.pattern.permute.xlu1 %v2126_v12  ;;  %733 = vperm.xlu0 %2026, %v2292_v11  }
  0x66   : > { %602 = vperm.xlu1 %2017, %v2258_v3  }
  0x69   : > { %2029 = vset.pattern.permute.xlu0 %v2133_v19 }
  0x6a   : > { %2018 = vset.pattern.permute.xlu1 %v2128_v14  ;;  %844 = vperm.xlu0 %2029, %v2249_v0  }
  0x6b   : > { %639 = vperm.xlu1 %2018, %v2249_v0  }
  0x6e   : > { %2030 = vset.pattern.permute.xlu0 %v2131_v17 }
  0x6f   : > { %2019 = vset.pattern.permute.xlu1 %v2126_v12  ;;  %762 = vperm.xlu0 %2030, %v2249_v0  }
  0x70   : > { %606 = vperm.xlu1 %2019, %v2281_v9  }
  0x73   : > { %774 = vperm.xlu0 %2030, %v2292_v11  }
  0x74   : > { %2021 = vset.pattern.permute.xlu1 %v2129_v15 }
  0x75   : > { %680 = vperm.xlu1 %2021, %v2249_v0  }
  0x77   : > { %2031 = vset.pattern.permute.xlu0 %v2132_v18 }
  0x78   : > { %803 = vperm.xlu0 %2031, %v2249_v0  }
  0x79   : > { %2022 = vset.pattern.permute.xlu1 %v2126_v12 }
  0x7a   : > { %610 = vperm.xlu1 %2022, %v2292_v11  }
  0x7c   : > { %815 = vperm.xlu0 %2031, %v2292_v11  }
  0x7e   : > { %2023 = vset.pattern.permute.xlu1 %v2129_v15 }
  0x7f   : > { %684 = vperm.xlu1 %2023, %v2258_v3  }
  0x83   : > { %688 = vperm.xlu1 %2023, %v2281_v9  }
  0x87   : > { %2024 = vset.pattern.permute.xlu1 %v2130_v16 }
  0x88   : > { %725 = vperm.xlu1 %2024, %v2258_v3  }
  0x8c   : > { %729 = vperm.xlu1 %2024, %v2281_v9  }
  0x90   : > { %2027 = vset.pattern.permute.xlu1 %v2131_v17 }
  0x91   : > { %766 = vperm.xlu1 %2027, %v2258_v3  }
  0x95   : > { %770 = vperm.xlu1 %2027, %v2281_v9  }
  0x96   : > { %v2329_v20 = vpop.permute.xlu1 %365 }
  0x99   : > { %2028 = vset.pattern.permute.xlu1 %v2132_v18 }
  0x9a   : > { %807 = vperm.xlu1 %2028, %v2258_v3   ;;  %v2332_v22 = vpop.permute.xlu1 %370 }
  0x9f   : > { %v2335_v25 = vpop.permute.xlu1 %438 }
  0xa4   : > { %v2340_v28 = vpop.permute.xlu1 %475 }
  0xa9   : > { %v2350_v33 = vpop.permute.xlu1 %375 }
  0xaa   : > { %v282_v21 = vpop.xlane.xlu0 %281 }
  0xab   : > { %v287_v23 = vmul.f32 0.03125, %v282_v21 }
  0xad   : > { %v2338_v26 = vsub.f32 %v2267_v4, %v287_v23 }
  0xae   : > { %v285_v24 = vpop.xlane.xlu0 %284  ;;  %v2353_v35 = vpop.permute.xlu1 %442 }
  0xaf   : > { %v288_v27 = vmul.f32 0.03125, %v285_v24  ;;  %v291_v30 = vmul.f32 %v2338_v26, %v2338_v26 }
  0xb1   : > { %v2343_v29 = vsub.f32 %v2270_v5, %v288_v27  ;;  %v293_v31 = vsel %vm279_vm0, %v291_v30, 0.0 }
  0xb3   : > { %v292_v32 = vmul.f32 %v2343_v29, %v2343_v29  ;;  %v2355_v36 = vpop.permute.xlu1 %479 }
  0xb5   : > { %v296_v34 = vsel %vm279_vm0, %v292_v32, 0.0 }
  0xb6   : > { %v2423_v18 = vpop.permute.xlu0 %434 }
  0xb8   : > { %v2357_v37 = vpop.permute.xlu1 %516 }
  0xbb   : > { %v2425_v21 = vpop.permute.xlu0 %487 }
  0xbc   : > { %3064 = vst [vmem:[#allocation14_spill] sm:$0xff] %v2425_v21 }
  0xbd   : > { %v2360_v38 = vpop.permute.xlu1 %380 }
  0xbe   : > { %294 = vadd.xlane.f32.xlu1 %v293_v31  ;;  %3055 = vst [vmem:[#allocation5_spill] sm:$0xff] %v2360_v38 }
  0xc0   : > { %v2428_v23 = vpop.permute.xlu0 %598 }
  0xc2   : > { %297 = vadd.xlane.f32.xlu1 %v296_v34  ;;  %v2364_v39 = vpop.permute.xlu1 %446 }
  0xc3   : > { %3056 = vst [vmem:[#allocation6_spill] sm:$0xff] %v2364_v39 }
  0xc5   : > { %v2431_v24 = vpop.permute.xlu0 %565 }
  0xc7   : > { %v2367_v40 = vpop.permute.xlu1 %483 }
  0xcc   : > { %v2369_v42 = vpop.permute.xlu1 %520 }
  0xd1   : > { %v2373_v43 = vpop.permute.xlu1 %557 }
  0xd3   : > { %811 = vperm.xlu1 %2028, %v2281_v9  }
  0xd6   : > { %v2376_v45 = vpop.permute.xlu1 %524 }
  0xd7   : > { %2032 = vset.pattern.permute.xlu1 %v2133_v19 }
  0xd8   : > { %848 = vperm.xlu1 %2032, %v2258_v3  }
  0xdb   : > { %v2379_v47 = vpop.permute.xlu1 %561 }
  0xdc   : > { %852 = vperm.xlu1 %2032, %v2281_v9  }
  0xe0   : > { %2033 = vset.pattern.permute.xlu1 %v2134_v41  ;;  %v2383_v48 = vpop.permute.xlu1 %528 }
  0xe1   : > { %889 = vperm.xlu1 %2033, %v2258_v3   ;;  %3057 = vst [vmem:[#allocation7_spill] sm:$0xff] %v2383_v48 }
  0xe5   : > { %893 = vperm.xlu1 %2033, %v2281_v9   ;;  %v2386_v50 = vpop.permute.xlu1 %602 }
  0xe9   : > { %2036 = vset.pattern.permute.xlu1 %v2135_v44 }
  0xea   : > { %930 = vperm.xlu1 %2036, %v2258_v3   ;;  %v2393_v52 = vpop.permute.xlu1 %639 }
  0xee   : > { %934 = vperm.xlu1 %2036, %v2281_v9  }
  0xef   : > { %v2395_v53 = vpop.permute.xlu1 %606 }
  0xf2   : > { %2038 = vset.pattern.permute.xlu1 %v2136_v46 }
  0xf3   : > { %971 = vperm.xlu1 %2038, %v2258_v3  }
  0xf4   : > { %v2397_v54 = vpop.permute.xlu1 %680 }
  0xf7   : > { %975 = vperm.xlu1 %2038, %v2281_v9  }
  0xf9   : > { %v2399_v55 = vpop.permute.xlu1 %610 }
  0xfa   : > { %3058 = vst [vmem:[#allocation8_spill] sm:$0xff] %v2399_v55 }
  0xfb   : > { %2040 = vset.pattern.permute.xlu1 %v2137_v49 }
  0xfc   : > { %1012 = vperm.xlu1 %2040, %v2258_v3  }
  0xfe   : > { %v2401_v56 = vpop.permute.xlu1 %684 }
 0x100   : > { %1016 = vperm.xlu1 %2040, %v2281_v9  }
 0x102   : > { %v2403_v57 = vpop.permute.xlu1 %688 }
 0x103   : > { %3059 = vst [vmem:[#allocation9_spill] sm:$0xff] %v2403_v57 }
 0x104   : > { %2042 = vset.pattern.permute.xlu1 %v3038_v1 }
 0x105   : > { %1042 = vperm.xlu1 %2042, %v1032_v51  }
 0x107   : > { %v2405_v58 = vpop.permute.xlu1 %725 }
 0x10b   : > { %v2407_v59 = vpop.permute.xlu1 %729 }
 0x10c   : > { %3060 = vst [vmem:[#allocation10_spill] sm:$0xff] %v2407_v59 }
 0x110   : > { %v2409_v60 = vpop.permute.xlu1 %766 }
 0x111   : > { %3061 = vst [vmem:[#allocation11_spill] sm:$0xff] %v2409_v60 }
 0x114   : > { %v2411_v61 = vpop.permute.xlu1 %770 }
 0x115   : > { %3062 = vst [vmem:[#allocation12_spill] sm:$0xff] %v2411_v61 }
 0x119   : > { %v2413_v62 = vpop.permute.xlu1 %807 }
 0x11a   : > { %3063 = vst [vmem:[#allocation13_spill] sm:$0xff] %v2413_v62 }
 0x14b   : > { %v295_v63 = vpop.xlane.xlu1 %294 }
 0x14c   : > { %v299_v2 = vmul.f32 0.03125, %v295_v63 }
 0x14e   : > { %v301_v3 = vadd.f32 1e-05, %v299_v2 }
 0x14f   : > { %v298_v4 = vpop.xlane.xlu1 %297 }
 0x150   : > { %2044 = vrsqrt.f32 %v301_v3  ;;  %v300_v5 = vmul.f32 0.03125, %v298_v4 }
 0x152   : > { %v302_v6 = vadd.f32 1e-05, %v300_v5 }
 0x153   : > { %v2480_v3 = vpop.permute.xlu1 %811 }
 0x154   : > { %2046 = vrsqrt.f32 %v302_v6  ;;  %3073 = vst [vmem:[#allocation23_spill] sm:$0xff] %v2480_v3 }
 0x157   : > { %v2482_v4 = vpop.permute.xlu1 %848 }
 0x158   : > { %3074 = vst [vmem:[#allocation24_spill] sm:$0xff] %v2482_v4 }
 0x15a   : > { %v2045_v7 = vpop.eup %2044 }
 0x15b   : > { %v305_v9 = vmul.f32 %v2045_v7, %v2338_v26  ;;  %v2434_v26 = vpop.permute.xlu0 %569  ;;  %v2484_v5 = vpop.permute.xlu1 %852 }
 0x15c   : > { %3065 = vst [vmem:[#allocation15_spill] sm:$0xff] %v2434_v26  ;;  %3075 = vst [vmem:[#allocation25_spill] sm:$0xff] %v2484_v5 }
 0x15d   : > { %v314_v12 = vmul.f32 %v1749_v8, %v305_v9 }
 0x15e   : > { %v2047_v13 = vpop.eup %2046 }
 0x15f   : > { %v323_v14 = vadd.f32 %v1750_v10, %v314_v12  ;;  %v306_v15 = vmul.f32 %v2047_v13, %v2343_v29  ;;  %v2438_v27 = vpop.permute.xlu0 %643 }
 0x160   : > { %v2486_v6 = vpop.permute.xlu1 %889 }
 0x161   : > { %325 = vxpose.xlu0.b32.start [1/2] (short) (narrow) %v323_v14, 32  ;;  %v315_v16 = vmul.f32 %v1749_v8, %v306_v15  ;;  %3076 = vst [vmem:[#allocation26_spill] sm:$0xff] %v2486_v6 }
 0x163   : > { %v324_v17 = vadd.f32 %v1750_v10, %v315_v16 }
 0x164   : > { %v2488_v7 = vpop.permute.xlu1 %893 }
 0x165   : > { %326 = vxpose.xlu0.b32.end [2/2] (short) (narrow) %v324_v17, 32  ;;  %3077 = vst [vmem:[#allocation27_spill] sm:$0xff] %v2488_v7 }
 0x169   : > { %v2490_v8 = vpop.permute.xlu1 %930 }
 0x16a   : > { %3078 = vst [vmem:[#allocation28_spill] sm:$0xff] %v2490_v8  ;;  %v357_v8 = vlaneseq }
 0x16c   : > { %v2674_v62 = vand.u32 127, %v357_v8 }
 0x16d   : > { %v2492_v9 = vpop.permute.xlu1 %934 }
 0x16e   : > { %3079 = vst [vmem:[#allocation29_spill] sm:$0xff] %v2492_v9  ;;  %vm412_vm2 = vcmp.ge.s32.totalorder %v2674_v62, 1  ;;  %vm457_vm3 = vcmp.ge.s32.totalorder %v2674_v62, 2  ;;  %vm498_vm4 = vcmp.ge.s32.totalorder %v2674_v62, 3  ;;  %vm539_vm5 = vcmp.ge.s32.totalorder %v2674_v62, 4 }
 0x16f   : > { %vm580_vm6 = vcmp.ge.s32.totalorder %v2674_v62, 5  ;;  %vm621_vm7 = vcmp.ge.s32.totalorder %v2674_v62, 6  ;;  %vm662_vm8 = vcmp.ge.s32.totalorder %v2674_v62, 7  ;;  %vm703_vm9 = vcmp.ge.s32.totalorder %v2674_v62, 8 }
 0x170   : > { %vm744_vm10 = vcmp.ge.s32.totalorder %v2674_v62, 9  ;;  %vm785_vm11 = vcmp.ge.s32.totalorder %v2674_v62, 10  ;;  %vm826_vm12 = vcmp.ge.s32.totalorder %v2674_v62, 11  ;;  %vm867_vm13 = vcmp.ge.s32.totalorder %v2674_v62, 12 }
 0x171   : > { %vm908_vm14 = vcmp.ge.s32.totalorder %v2674_v62, 13  ;;  %vm949_vm15 = vcmp.ge.s32.totalorder %v2674_v62, 14 }
 0x172   : > { %v2494_v10 = vpop.permute.xlu1 %971 }
 0x173   : > { %3080 = vst [vmem:[#allocation30_spill] sm:$0xff] %v2494_v10 }
 0x176   : > { %v2496_v12 = vpop.permute.xlu1 %975 }
 0x177   : > { %3081 = vst [vmem:[#allocation31_spill] sm:$0xff] %v2496_v12 }
 0x17b   : > { %v2498_v13 = vpop.permute.xlu1 %1012 }
 0x17c   : > { %3082 = vst [vmem:[#allocation32_spill] sm:$0xff] %v2498_v13 }
 0x17f   : > { %v2500_v14 = vpop.permute.xlu1 %1016 }
 0x180   : > { %3083 = vst [vmem:[#allocation33_spill] sm:$0xff] %v2500_v14 }
 0x184   : > { %v2502_v15 = vpop.permute.xlu1 %1042 }
 0x185   : > { %3084 = vst [vmem:[#allocation34_spill] sm:$0xff] %v2502_v15 }
 0x18e   : > { %2034 = vset.pattern.permute.xlu0 %v2133_v19  ;;  %v2441_v19 = vpop.permute.xlu0 %647 }
 0x192   : > { %v2444_v29 = vpop.permute.xlu0 %651 }
 0x193   : > { %3066 = vst [vmem:[#allocation16_spill] sm:$0xff] %v2444_v29 }
 0x196   : > { %856 = vperm.xlu0 %2034, %v2292_v11   ;;  %v2447_v30 = vpop.permute.xlu0 %692 }
 0x197   : > { %3067 = vst [vmem:[#allocation17_spill] sm:$0xff] %v2447_v30 }
 0x19a   : > { %2035 = vset.pattern.permute.xlu0 %v2134_v41  ;;  %v2450_v31 = vpop.permute.xlu0 %721 }
 0x19b   : > { %885 = vperm.xlu0 %2035, %v2249_v0  }
 0x19e   : > { %v2452_v32 = vpop.permute.xlu0 %733 }
 0x19f   : > { %897 = vperm.xlu0 %2035, %v2292_v11   ;;  %3068 = vst [vmem:[#allocation18_spill] sm:$0xff] %v2452_v32 }
 0x1a2   : > { %v2454_v34 = vpop.permute.xlu0 %844 }
 0x1a3   : > { %2037 = vset.pattern.permute.xlu0 %v2135_v44 }
 0x1a4   : > { %926 = vperm.xlu0 %2037, %v2249_v0  }
 0x1a6   : > { %v2456_v41 = vpop.permute.xlu0 %762 }
 0x1a8   : > { %938 = vperm.xlu0 %2037, %v2292_v11  }
 0x1aa   : > { %v2458_v44 = vpop.permute.xlu0 %774 }
 0x1ab   : > { %3069 = vst [vmem:[#allocation19_spill] sm:$0xff] %v2458_v44 }
 0x1ac   : > { %2039 = vset.pattern.permute.xlu0 %v2136_v46 }
 0x1ad   : > { %967 = vperm.xlu0 %2039, %v2249_v0  }
 0x1ae   : > { %v2460_v46 = vpop.permute.xlu0 %803 }
 0x1b1   : > { %979 = vperm.xlu0 %2039, %v2292_v11  }
 0x1b2   : > { %v2462_v51 = vpop.permute.xlu0 %815 }
 0x1b3   : > { %3070 = vst [vmem:[#allocation20_spill] sm:$0xff] %v2462_v51 }
 0x1b5   : > { %2041 = vset.pattern.permute.xlu0 %v2137_v49 }
 0x1b6   : > { %1008 = vperm.xlu0 %2041, %v2249_v0  }
 0x1e1   : > { %v2464_v63 = vpop.trf.xlu0 }
 0x1e2   : > { %388 = vrot.lane.b32.xlu1 %v2464_v63, %s2138_s18 }
 0x1e5   : > { %v2468_v0 = vpop.trf.xlu0 }
 0x1e6   : > { %3071 = vst [vmem:[#allocation21_spill] sm:$0xff] %v2468_v0  ;;  %391 = vrot.lane.b32.xlu1 %v2468_v0, %s2138_s18 }
 0x1e9   : > { %v2472_v49 = vpop.trf.xlu0 }
 0x1ea   : > { %394 = vrot.lane.b32.xlu1 %v2472_v49, %s2138_s18 }
 0x1ed   : > { %v2476_v2 = vpop.trf.xlu0 }
 0x1ee   : > { %3072 = vst [vmem:[#allocation22_spill] sm:$0xff] %v2476_v2  ;;  %397 = vrot.lane.b32.xlu1 %v2476_v2, %s2138_s18 }
 0x254   : > { %v389_v16 = vpop.permute.xlu1 %388 }
 0x255   : > { %v390_v17 = vsel %vm387_vm1, %v389_v16, %v2464_v63 }
 0x256   : > { %400 = vrot.lane.b32.xlu1 %v390_v17, %s2138_s18 }
 0x258   : > { %v392_v1 = vpop.permute.xlu1 %391 }
 0x259   : > { %v393_v9 = vsel %vm387_vm1, %v392_v1, %v2468_v0 }
 0x25a   : > { %402 = vrot.lane.b32.xlu1 %v393_v9, %s2138_s18 }
 0x25c   : > { %v395_v12 = vpop.permute.xlu1 %394 }
 0x25d   : > { %v396_v51 = vsel %vm387_vm1, %v395_v12, %v2472_v49 }
 0x25e   : > { %404 = vrot.lane.b32.xlu1 %v396_v51, %s2138_s18 }
 0x260   : > { %v398_v14 = vpop.permute.xlu1 %397 }
 0x261   : > { %v399_v44 = vsel %vm387_vm1, %v398_v14, %v2476_v2 }
 0x262   : > { %406 = vrot.lane.b32.xlu1 %v399_v44, %s2138_s18  ;;  %s3043_s18 = smov 125  }
 0x2c8   : > { %v401_v16 = vpop.permute.xlu1 %400 }
 0x2c9   : > { %v408_v17 = vsel %vm387_vm1, %v401_v16, %v2464_v63  ;;  %v1031_v16 = vld [vmem:[%s3034_s4] sm:$0xff] }
 0x2ca   : > { %499 = vrot.lane.b32.xlu0 %v408_v17, %s2139_s19  ;;  %417 = vrot.lane.b32.xlu1 %v408_v17, %s2140_s20 }
 0x2cc   : > { %v403_v1 = vpop.permute.xlu1 %402 }
 0x2cd   : > { %v2524_v44 = vsel %vm387_vm1, %v403_v1, %v2468_v0  ;;  %v3086_v1 = vmov 0  }
 0x2ce   : > { %581 = vrot.lane.b32.xlu0 %v408_v17, %s3047_s22  ;;  %458 = vrot.lane.b32.xlu1 %v408_v17, %s2142_s23 }
 0x2d0   : > { %v405_v51 = vpop.permute.xlu1 %404 }
 0x2d1   : > { %v2565_v9 = vsel %vm387_vm1, %v405_v51, %v2472_v49 }
 0x2d2   : > { %540 = vrot.lane.b32.xlu1 %v408_v17, %s2143_s29  ;;  %419 = vrot.lane.b32.xlu0 %v2524_v44, %s2140_s20 }
 0x2d4   : > { %v407_v12 = vpop.permute.xlu1 %406 }
 0x2d5   : > { %v2573_v14 = vsel %vm387_vm1, %v407_v12, %v2476_v2  ;;  %vm990_vm1 = vcmp.ge.s32.totalorder %v2674_v62, 15 }
 0x2d6   : > { %622 = vrot.lane.b32.xlu1 %v408_v17, %s2144_s8  ;;  %501 = vrot.lane.b32.xlu0 %v2524_v44, %s2139_s19 }
 0x2da   : > { %663 = vrot.lane.b32.xlu1 %v408_v17, %s3039_s9  ;;  %583 = vrot.lane.b32.xlu0 %v2524_v44, %s3047_s22 }
 0x2de   : > { %704 = vrot.lane.b32.xlu1 %v408_v17, %s3041_s13  ;;  %624 = vrot.lane.b32.xlu0 %v2524_v44, %s2144_s8 }
 0x2e2   : > { %745 = vrot.lane.b32.xlu1 %v408_v17, %s3049_s14  ;;  %665 = vrot.lane.b32.xlu0 %v2524_v44, %s3039_s9  ;;  %s3048_s9 = smov 126  }
 0x2e6   : > { %786 = vrot.lane.b32.xlu1 %v408_v17, %s2148_s15  ;;  %706 = vrot.lane.b32.xlu0 %v2524_v44, %s3041_s13  ;;  %s2153_s13 = smov 127  }
 0x2ea   : > { %827 = vrot.lane.b32.xlu1 %v408_v17, %s3045_s16  ;;  %747 = vrot.lane.b32.xlu0 %v2524_v44, %s3049_s14 }
 0x2ee   : > { %868 = vrot.lane.b32.xlu1 %v408_v17, %s2150_s17  ;;  %788 = vrot.lane.b32.xlu0 %v2524_v44, %s2148_s15 }
 0x2f2   : > { %909 = vrot.lane.b32.xlu1 %v408_v17, %s3043_s18  ;;  %829 = vrot.lane.b32.xlu0 %v2524_v44, %s3045_s16  ;;  %s3093_s16 = smov 125  }
 0x2f6   : > { %950 = vrot.lane.b32.xlu1 %v408_v17, %s3048_s9  ;;  %870 = vrot.lane.b32.xlu0 %v2524_v44, %s2150_s17 }
 0x2fa   : > { %991 = vrot.lane.b32.xlu1 %v408_v17, %s2153_s13  ;;  %911 = vrot.lane.b32.xlu0 %v2524_v44, %s3043_s18  ;;  %v2585_v17 = vpop.permute.xlu0 %856  ;;  %s3088_s18 = smov 119  }
 0x2fb   : > { %3085 = vst [vmem:[#allocation35_spill] sm:$0xff] %v2585_v17 }
 0x2fe   : > { %460 = vrot.lane.b32.xlu1 %v2524_v44, %s2142_s23  ;;  %952 = vrot.lane.b32.xlu0 %v2524_v44, %s3048_s9  ;;  %v2592_v51 = vpop.permute.xlu0 %885 }
 0x302   : > { %542 = vrot.lane.b32.xlu1 %v2524_v44, %s2143_s29  ;;  %503 = vrot.lane.b32.xlu0 %v2565_v9, %s2139_s19  ;;  %v2603_v12 = vpop.permute.xlu0 %897 }
 0x303   : > { %3087 = vst [vmem:[#allocation36_spill] sm:$0xff] %v2603_v12 }
 0x306   : > { %421 = vrot.lane.b32.xlu1 %v2565_v9, %s2140_s20  ;;  %423 = vrot.lane.b32.xlu0 %v2573_v14, %s2140_s20  ;;  %s3091_s20 = smov 123  }
 0x30a   : > { %462 = vrot.lane.b32.xlu1 %v2565_v9, %s2142_s23  ;;  %1020 = vperm.xlu0 %2041, %v2292_v11   ;;  %v1034_v11 = vld [vmem:[%s3034_s4 + $0x18] sm:$0xff] }
 0x30e   : > { %544 = vrot.lane.b32.xlu1 %v2565_v9, %s2143_s29  ;;  %2043 = vset.pattern.permute.xlu0 %v3086_v1 }
 0x30f   : > { %1037 = vperm.xlu0 %2043, %v1031_v16   ;;  %v2609_v16 = vpop.permute.xlu0 %926 }
 0x312   : > { %585 = vrot.lane.b32.xlu1 %v2565_v9, %s3047_s22  ;;  %s3089_s22 = smov 120  }
 0x313   : > { %954 = vrot.lane.b32.xlu0 %v2565_v9, %s3048_s9  ;;  %v2615_v1 = vpop.permute.xlu0 %938  ;;  %s3095_s9 = smov 117  }
 0x314   : > { %3090 = vst [vmem:[#allocation37_spill] sm:$0xff] %v2615_v1  ;;  %v1033_v1 = vld [vmem:[%s3034_s4 + $0x10] sm:$0xff] }
 0x316   : > { %626 = vrot.lane.b32.xlu1 %v2565_v9, %s2144_s8 }
 0x317   : > { %874 = vrot.lane.b32.xlu0 %v2573_v14, %s2150_s17 }
 0x31a   : > { %667 = vrot.lane.b32.xlu1 %v2565_v9, %s3088_s18 }
 0x31b   : > { %1052 = vperm.xlu0 %2043, %v1034_v11   ;;  %v2621_v11 = vpop.permute.xlu0 %967 }
 0x31e   : > { %708 = vrot.lane.b32.xlu1 %v2565_v9, %s3089_s22 }
 0x31f   : > { %997 = vrot.lane.b32.xlu0 %v2573_v14, %s2153_s13  ;;  %v2625_v12 = vpop.permute.xlu0 %979 }
 0x320   : > { %3092 = vst [vmem:[#allocation38_spill] sm:$0xff] %v2625_v12 }
 0x322   : > { %749 = vrot.lane.b32.xlu1 %v2565_v9, %s3049_s14 }
 0x323   : > { %v2632_v17 = vpop.permute.xlu0 %1008 }
 0x324   : > { %3094 = vst [vmem:[#allocation39_spill] sm:$0xff] %v2632_v17  ;;  %v383_v17 = vmul.f32 %v2329_v20, %v2464_v63 }
 0x326   : > { %790 = vrot.lane.b32.xlu1 %v2565_v9, %s2148_s15 }
 0x32a   : > { %831 = vrot.lane.b32.xlu1 %v2565_v9, %s3091_s20 }
 0x32e   : > { %872 = vrot.lane.b32.xlu1 %v2565_v9, %s2150_s17 }
 0x332   : > { %913 = vrot.lane.b32.xlu1 %v2565_v9, %s3093_s16 }
 0x336   : > { %1047 = vperm.xlu1 %2042, %v1033_v1  }
 0x33a   : > { %993 = vrot.lane.b32.xlu1 %v2524_v44, %s2153_s13 }
 0x33c   : > { %v418_v32 = vpop.permute.xlu1 %417  ;;  %v500_v30 = vpop.permute.xlu0 %499 }
 0x33d   : > { %v429_v8 = vsel %vm412_vm2, %v418_v32, 0.0 }
 0x33e   : > { %464 = vrot.lane.b32.xlu1 %v2573_v14, %s2142_s23  ;;  %v449_v59 = vmul.f32 %v2423_v18, %v429_v8 }
 0x340   : > { %v459_v29 = vpop.permute.xlu1 %458  ;;  %v2638_v12 = vpop.permute.xlu0 %581 }
 0x341   : > { %v470_v61 = vsel %vm457_vm3, %v459_v29, 0.0  ;;  %v453_v29 = vadd.f32 %v449_v59, %v383_v17 }
 0x342   : > { %505 = vrot.lane.b32.xlu1 %v2573_v14, %s2139_s19  ;;  %s3096_s19 = smov 121   ;;  %v490_v32 = vmul.f32 %v2340_v28, %v470_v61 }
 0x344   : > { %v541_v55 = vpop.permute.xlu1 %540  ;;  %v420_v26 = vpop.permute.xlu0 %419  ;;  %v494_v20 = vadd.f32 %v490_v32, %v453_v29 }
 0x345   : > { %v552_v59 = vsel %vm539_vm5, %v541_v55, 0.0 }
 0x346   : > { %546 = vrot.lane.b32.xlu1 %v2573_v14, %s2143_s29  ;;  %v572_v8 = vmul.f32 %v2373_v43, %v552_v59 }
 0x348   : > { %v2644_v1 = vpop.permute.xlu1 %622  ;;  %v502_v48 = vpop.permute.xlu0 %501 }
 0x349   : > { %v512_v17 = vsel %vm498_vm4, %v502_v48, 0.0 }
 0x34a   : > { %587 = vrot.lane.b32.xlu1 %v2573_v14, %s3095_s9  ;;  %v532_v32 = vmul.f32 %v2369_v42, %v512_v17  ;;  %s2154_s9 = smov 96  }
 0x34c   : > { %v2648_v44 = vpop.permute.xlu1 %663  ;;  %v584_v21 = vpop.permute.xlu0 %583 }
 0x34d   : > { %v594_v48 = vsel %vm580_vm6, %v584_v21, 0.0 }
 0x34e   : > { %628 = vrot.lane.b32.xlu1 %v2573_v14, %s2144_s8  ;;  %v614_v21 = vmul.f32 %v2386_v50, %v594_v48  ;;  %v634_v50 = vsel %vm621_vm7, %v2644_v1, 0.0  ;;  %s1760_s8 = sshll.u32 %s2219_s28, 8 }
 0x350   : > { %v2652_v38 = vpop.permute.xlu1 %704  ;;  %v625_v2 = vpop.permute.xlu0 %624 }
 0x351   : > { %v635_v42 = vsel %vm621_vm7, %v625_v2, 0.0 }
 0x352   : > { %669 = vrot.lane.b32.xlu1 %v2573_v14, %s3088_s18  ;;  %v655_v17 = vmul.f32 %v2438_v27, %v635_v42  ;;  %s2155_s18 = smov [#allocation2]  }
 0x354   : > { %v2656_v39 = vpop.permute.xlu1 %745  ;;  %v2658_v15 = vpop.permute.xlu0 %665 }
 0x355   : > { %v676_v59 = vsel %vm662_vm8, %v2658_v15, 0.0 }
 0x356   : > { %710 = vrot.lane.b32.xlu1 %v2573_v14, %s3089_s22  ;;  %s3101_s22 = smov 126   ;;  %v696_v1 = vmul.f32 %v2401_v56, %v676_v59 }
 0x358   : > { %v2662_v13 = vpop.permute.xlu1 %786  ;;  %v2664_v10 = vpop.permute.xlu0 %706 }
 0x359   : > { %v717_v15 = vsel %vm703_vm9, %v2664_v10, 0.0 }
 0x35a   : > { %751 = vrot.lane.b32.xlu1 %v2573_v14, %s3096_s19  ;;  %s269_s19 = sand.u32 1, %s2112_s25  }
 0x35b   : > { %s2989_s17 = scalar_lea.sflag [#allocation3], %s269_s19 }
 0x35c   : > { %v2668_v6 = vpop.permute.xlu1 %827  ;;  %v2670_v4 = vpop.permute.xlu0 %747 }
 0x35d   : > { %3097 = vst [vmem:[#allocation40_spill] sm:$0xff] %v2670_v4 }
 0x35e   : > { %792 = vrot.lane.b32.xlu1 %v2573_v14, %s2148_s15  ;;  %s2983_s15 = scalar_lea.hbm %s3037_s7, %s1760_s8 }
 0x360   : > { %v2676_v60 = vpop.permute.xlu1 %868  ;;  %v2678_v7 = vpop.permute.xlu0 %788 }
 0x361   : > { %3098 = vst [vmem:[#allocation41_spill] sm:$0xff] %v2678_v7 }
 0x362   : > { %833 = vrot.lane.b32.xlu1 %v2573_v14, %s3091_s20  ;;  %s2062_s20 = sshll.u32 %s2155_s18, 4  ;;  %s2063_s20 = int_to_ptr.vmem [resolvable:$false] %s2062_s20 }
 0x364   : > { %v2683_v5 = vpop.permute.xlu1 %909  ;;  %v2685_v3 = vpop.permute.xlu0 %829 }
 0x365   : > { %3099 = vst [vmem:[#allocation42_spill] sm:$0xff] %v2685_v3  ;;  %v430_v3 = vsel %vm412_vm2, %v420_v26, 0.0  ;;  %v511_v26 = vsel %vm498_vm4, %v500_v30, 0.0 }
 0x366   : > { %915 = vrot.lane.b32.xlu1 %v2573_v14, %s3093_s16  ;;  %v450_v18 = vmul.f32 %v2335_v25, %v430_v3  ;;  %v531_v3 = vmul.f32 %v2357_v37, %v511_v26  ;;  %s2064_s16 = scalar_lea.vmem %s2063_s20, 512 }
 0x368   : > { %v2692_v4 = vpop.permute.xlu1 %950  ;;  %v2694_v7 = vpop.permute.xlu0 %870 }
 0x369   : > { %3100 = vst [vmem:[#allocation43_spill] sm:$0xff] %v2694_v7 }
 0x36a   : > { %956 = vrot.lane.b32.xlu1 %v2573_v14, %s3101_s22  ;;  %v384_v14 = vmul.f32 %v2332_v22, %v2468_v0  ;;  %v535_v22 = vadd.f32 %v531_v3, %v494_v20  ;;  %v385_v3 = vmul.f32 %v2350_v33, %v2472_v49  ;;  %s1746_s22 = sshll.u32 %s269_s19, 4 }
 0x36b   : > { %s271_s23 = scalar_lea.vmem [#allocation2], %s1746_s22 }
 0x36c   : > { %v2707_v57 = vpop.permute.xlu1 %991  ;;  %v2709_v7 = vpop.permute.xlu0 %911  ;;  %s1680_s29 = sshll.u32 %s271_s23, 4  ;;  %s2985_s29 = int_to_ptr.vmem [resolvable:$true] %s1680_s29 }
 0x36d   : > { %s2058_s28 = scalar_lea.vmem %s2985_s29, 256  ;;  %p2065_p0 = scmp.lt.s32.totalorder %s2985_s29, %s2063_s20 }
 0x36e   : > { %995 = vrot.lane.b32.xlu1 %v2565_v9, %s2153_s13  ;;  %v454_v9 = vadd.f32 %v450_v18, %v384_v14  ;;  %v576_v18 = vadd.f32 %v572_v8, %v535_v22  ;;  %v716_v8 = vsel %vm703_vm9, %v2652_v38, 0.0  ;;  %v757_v38 = vsel %vm744_vm10, %v2656_v39, 0.0  ;;  %p2059_p11 = scmp.ne.s32.totalorder %s2985_s29, %s2058_s28  ;;  %p2066_p1 = scmp.lt.s32.totalorder %s2064_s16, %s2058_s28 }
 0x370   : > { %v461_v28 = vpop.permute.xlu1 %460  ;;  %v2719_v61 = vpop.permute.xlu0 %952  ;;  %p2060_p12 = pnand %p2059_p11, %p2236_p5  ;;  %p2067_p2 = por %p2066_p1, %p2065_p0 }
 0x371   : > { %v471_v25 = vsel %vm457_vm3, %v461_v28, 0.0 }
 0x372   : > { %v491_v30 = vmul.f32 %v2355_v36, %v471_v25  ;;  %v593_v36 = vsel %vm580_vm6, %v2638_v12, 0.0  ;;  %p2061_p13 = pneg %p2060_p12 }
 0x373   : > { %v613_v12 = vmul.f32 %v2428_v23, %v593_v36 }
 0x374   : > { %v495_v29 = vadd.f32 %v491_v30, %v454_v9  ;;  %v543_v55 = vpop.permute.xlu1 %542  ;;  %v504_v0 = vpop.permute.xlu0 %503  ;;  %v675_v30 = vsel %vm662_vm8, %v2648_v44, 0.0  ;;  %p2068_p3 = pnand %p2067_p2, %p2061_p13 }
 0x375   : > { %v553_v28 = vsel %vm539_vm5, %v543_v55, 0.0  ;;  %v617_v9 = vadd.f32 %v613_v12, %v576_v18  ;;  %v513_v10 = vsel %vm498_vm4, %v504_v0, 0.0  ;;  %v695_v55 = vmul.f32 %v2397_v54, %v675_v30  ;;  %v3102_v30 = vld [vmem:[#allocation9_spill] sm:$0xff] }
 0x376   : > { %v536_v37 = vadd.f32 %v532_v32, %v495_v29  ;;  %v573_v43 = vmul.f32 %v2379_v47, %v553_v28  ;;  %v737_v32 = vmul.f32 %v2405_v58, %v717_v15  ;;  %v533_v0 = vmul.f32 %v2376_v45, %v513_v10 }
 0x377   : > { %v736_v58 = vmul.f32 %v2450_v31, %v716_v8  ;;  %v798_v54 = vsel %vm785_vm11, %v2662_v13, 0.0  ;;  %v777_v45 = vmul.f32 %v2456_v41, %v757_v38  ;;  %v839_v31 = vsel %vm826_vm12, %v2668_v6, 0.0  ;;  %v3105_v38 = vld [vmem:[#allocation12_spill] sm:$0xff] }
 0x378   : > { %v577_v26 = vadd.f32 %v573_v43, %v536_v37  ;;  %v422_v20 = vpop.permute.xlu1 %421  ;;  %v424_v14 = vpop.permute.xlu0 %423 }
 0x379   : > { %v431_v47 = vsel %vm412_vm2, %v422_v20, 0.0  ;;  %v2754_v2 = vsel %vm412_vm2, %v424_v14, 0.0  ;;  %v859_v14 = vmul.f32 %v2454_v34, %v839_v31  ;;  %v962_v34 = vsel %vm949_vm15, %v2692_v4, 0.0 }
 0x37a   : > { %v618_v25 = vadd.f32 %v614_v21, %v577_v26  ;;  %v451_v23 = vmul.f32 %v2353_v35, %v431_v47  ;;  %v654_v35 = vmul.f32 %v2393_v52, %v634_v50  ;;  %v818_v26 = vmul.f32 %v2460_v46, %v798_v54 }
 0x37b   : > { %v921_v46 = vsel %vm908_vm14, %v2683_v5, 0.0 }
 0x37c   : > { %v659_v27 = vadd.f32 %v655_v17, %v618_v25  ;;  %v463_v22 = vpop.permute.xlu1 %462  ;;  %v455_v44 = vadd.f32 %v451_v23, %v385_v3  ;;  %v658_v36 = vadd.f32 %v654_v35, %v617_v9  ;;  %v941_v5 = vmul.f32 %v2609_v16, %v921_v46 }
 0x37d   : > { %v472_v33 = vsel %vm457_vm3, %v463_v22, 0.0  ;;  %v982_v3 = vmul.f32 %v2621_v11, %v962_v34 }
 0x37e   : > { %v700_v29 = vadd.f32 %v696_v1, %v659_v27  ;;  %v492_v56 = vmul.f32 %v2367_v40, %v472_v33  ;;  %v699_v43 = vadd.f32 %v695_v55, %v658_v36  ;;  %v3104_v33 = vld [vmem:[#allocation10_spill] sm:$0xff]  ;;  %v3106_v36 = vld [vmem:[#allocation23_spill] sm:$0xff] }
 0x380   : > { %v2786_v52 = vadd.f32 %v737_v32, %v700_v29  ;;  %v496_v48 = vadd.f32 %v492_v56, %v455_v44  ;;  %v545_v28 = vpop.permute.xlu1 %544  ;;  %v740_v21 = vadd.f32 %v736_v58, %v699_v43 }
 0x381   : > { %v554_v40 = vsel %vm539_vm5, %v545_v28, 0.0 }
 0x382   : > { %v537_v37 = vadd.f32 %v533_v0, %v496_v48  ;;  %v574_v39 = vmul.f32 %v2431_v24, %v554_v40  ;;  %v880_v24 = vsel %vm867_vm13, %v2676_v60, 0.0  ;;  %v781_v20 = vadd.f32 %v777_v45, %v740_v21 }
 0x383   : > { %v900_v47 = vmul.f32 %v2592_v51, %v880_v24  ;;  %v1003_v51 = vsel %vm990_vm1, %v2707_v57, 0.0 }
 0x384   : > { %v578_v42 = vadd.f32 %v574_v39, %v537_v37  ;;  %v586_v18 = vpop.permute.xlu1 %585  ;;  %v822_v59 = vadd.f32 %v818_v26, %v781_v20  ;;  %v3107_v37 = vld [vmem:[#allocation25_spill] sm:$0xff]  ;;  %v3109_v26 = vld [vmem:[#allocation27_spill] sm:$0xff] }
 0x385   : > { %v595_v13 = vsel %vm580_vm6, %v586_v18, 0.0 }
 0x386   : > { %v615_v41 = vmul.f32 %v2395_v53, %v595_v13  ;;  %v863_v17 = vadd.f32 %v859_v14, %v822_v59  ;;  %v3111_v14 = vld [vmem:[#allocation41_spill] sm:$0xff] }
 0x387   : > { %v799_v46 = vsel %vm785_vm11, %v3111_v14, 0.0 }
 0x388   : > { %v619_v6 = vadd.f32 %v615_v41, %v578_v42  ;;  %v627_v12 = vpop.permute.xlu1 %626  ;;  %v904_v15 = vadd.f32 %v900_v47, %v863_v17  ;;  %v3108_v42 = vld [vmem:[#allocation40_spill] sm:$0xff]  ;;  %v3110_v41 = vld [vmem:[#allocation11_spill] sm:$0xff]  ;;  %v3113_v47 = vld [vmem:[#allocation42_spill] sm:$0xff] }
 0x389   : > { %v636_v60 = vsel %vm621_vm7, %v627_v12, 0.0  ;;  %v2819_v53 = vpop.permute.xlu0 %1020  ;;  %v758_v18 = vsel %vm744_vm10, %v3108_v42, 0.0  ;;  %v3112_v12 = vld [vmem:[#allocation13_spill] sm:$0xff] }
 0x38a   : > { %v656_v50 = vmul.f32 %v2441_v19, %v636_v60  ;;  %v945_v27 = vadd.f32 %v941_v5, %v904_v15  ;;  %v3103_v19 = vld [vmem:[#allocation39_spill] sm:$0xff]  ;;  %v778_v20 = vmul.f32 %v3110_v41, %v758_v18  ;;  %v819_v59 = vmul.f32 %v3112_v12, %v799_v46  ;;  %v3128_v46 = vld [vmem:[#allocation8_spill] sm:$0xff] }
 0x38b   : > { %v1023_v22 = vmul.f32 %v3103_v19, %v1003_v51  ;;  %v840_v60 = vsel %vm826_vm12, %v3113_v47, 0.0  ;;  %v3115_v5 = vld [vmem:[#allocation43_spill] sm:$0xff] }
 0x38c   : > { %v660_v25 = vadd.f32 %v656_v50, %v619_v6  ;;  %v668_v23 = vpop.permute.xlu1 %667  ;;  %v986_v8 = vadd.f32 %v982_v3, %v945_v27  ;;  %v782_v6 = vadd.f32 %v778_v20, %v2786_v52  ;;  %v3114_v50 = vld [vmem:[#allocation24_spill] sm:$0xff]  ;;  %v881_v51 = vsel %vm867_vm13, %v3115_v5, 0.0  ;;  %v3130_v5 = vld [vmem:[#allocation17_spill] sm:$0xff] }
 0x38d   : > { %v677_v9 = vsel %vm662_vm8, %v668_v23, 0.0  ;;  %v860_v17 = vmul.f32 %v3114_v50, %v840_v60  ;;  %v3116_v23 = vld [vmem:[#allocation26_spill] sm:$0xff]  ;;  %v922_v52 = vsel %vm908_vm14, %v2709_v7, 0.0  ;;  %v963_v27 = vsel %vm949_vm15, %v2719_v61, 0.0  ;;  %v3120_v7 = vld [vmem:[#allocation21_spill] sm:$0xff]  ;;  %v3129_v60 = vld [vmem:[#allocation16_spill] sm:$0xff] }
 0x38e   : > { %v697_v1 = vmul.f32 %v3102_v30, %v677_v9  ;;  %v1038_v4 = vpop.permute.xlu0 %1037  ;;  %v1027_v11 = vadd.f32 %v1023_v22, %v986_v8  ;;  %v823_v34 = vadd.f32 %v819_v59, %v782_v6  ;;  %v901_v15 = vmul.f32 %v3116_v23, %v881_v51  ;;  %v3117_v30 = vld [vmem:[#allocation28_spill] sm:$0xff]  ;;  %v3118_v22 = vld [vmem:[#allocation30_spill] sm:$0xff] }
 0x38f   : > { %v1055_v10 = vmul.f32 %v1038_v4, %v2464_v63 }
 0x390   : > { %v701_v35 = vadd.f32 %v697_v1, %v660_v25  ;;  %v709_v16 = vpop.permute.xlu1 %708  ;;  %v864_v25 = vadd.f32 %v860_v17, %v823_v34  ;;  %v942_v1 = vmul.f32 %v3117_v30, %v922_v52 }
 0x391   : > { %v718_v57 = vsel %vm703_vm9, %v709_v16, 0.0  ;;  %v1059_v56 = vadd.f32 %v1055_v10, %v1027_v11 }
 0x392   : > { %v738_v32 = vmul.f32 %v3104_v33, %v718_v57  ;;  %v905_v9 = vadd.f32 %v901_v15, %v864_v25  ;;  %v3119_v57 = vld [vmem:[#allocation32_spill] sm:$0xff]  ;;  %v955_v20 = vpop.permute.xlu0 %954 }
 0x394   : > { %v742_v29 = vadd.f32 %v738_v32, %v701_v35  ;;  %v750_v44 = vpop.permute.xlu1 %749  ;;  %v946_v19 = vadd.f32 %v942_v1, %v905_v9  ;;  %v983_v35 = vmul.f32 %v3118_v22, %v963_v27  ;;  %v3121_v32 = vld [vmem:[#allocation34_spill] sm:$0xff]  ;;  %v3132_v27 = vld [vmem:[#allocation19_spill] sm:$0xff] }
 0x395   : > { %v759_v55 = vsel %vm744_vm10, %v750_v44, 0.0  ;;  %v1056_v11 = vmul.f32 %v3121_v32, %v3120_v7  ;;  %v3131_v9 = vld [vmem:[#allocation18_spill] sm:$0xff] }
 0x396   : > { %v779_v0 = vmul.f32 %v3105_v38, %v759_v55  ;;  %v987_v10 = vadd.f32 %v983_v35, %v946_v19  ;;  %v875_v15 = vpop.permute.xlu0 %874 }
 0x397   : > { %1063 = vxpose.xlu1.b32.start [1/4] (short) (narrow) %v1059_v56, 16  ;;  %v883_v32 = vsel %vm867_vm13, %v875_v15, 0.0 }
 0x398   : > { %v783_v48 = vadd.f32 %v779_v0, %v742_v29  ;;  %v791_v28 = vpop.permute.xlu1 %790 }
 0x399   : > { %v800_v63 = vsel %vm785_vm11, %v791_v28, 0.0 }
 0x39a   : > { %v820_v58 = vmul.f32 %v3106_v36, %v800_v63 }
 0x39c   : > { %v832_v40 = vpop.permute.xlu1 %831  ;;  %v824_v43 = vadd.f32 %v820_v58, %v783_v48  ;;  %v3122_v48 = vld [vmem:[#allocation6_spill] sm:$0xff] }
 0x39d   : > { %v841_v54 = vsel %vm826_vm12, %v832_v40, 0.0  ;;  %v452_v28 = vmul.f32 %v3122_v48, %v2754_v2  ;;  %v3123_v58 = vld [vmem:[#allocation22_spill] sm:$0xff]  ;;  %v3124_v40 = vld [vmem:[#allocation5_spill] sm:$0xff] }
 0x39e   : > { %v861_v39 = vmul.f32 %v3107_v37, %v841_v54  ;;  %v386_v54 = vmul.f32 %v3124_v40, %v3123_v58  ;;  %v3125_v37 = vld [vmem:[#allocation14_spill] sm:$0xff] }
 0x3a0   : > { %v873_v45 = vpop.permute.xlu1 %872  ;;  %v865_v21 = vadd.f32 %v861_v39, %v824_v43 }
 0x3a1   : > { %v882_v31 = vsel %vm867_vm13, %v873_v45, 0.0  ;;  %v456_v45 = vadd.f32 %v452_v28, %v386_v54 }
 0x3a2   : > { %v902_v13 = vmul.f32 %v3109_v26, %v882_v31  ;;  %v3126_v31 = vld [vmem:[#allocation7_spill] sm:$0xff] }
 0x3a3   : > { %v3127_v26 = vld [vmem:[#allocation15_spill] sm:$0xff] }
 0x3a4   : > { %v2853_v24 = vadd.f32 %v902_v13, %v865_v21  ;;  %v914_v3 = vpop.permute.xlu1 %913 }
 0x3b5   : > { %v2873_v4 = vpop.permute.xlu1 %1047 }
 0x3b9   : > { %v994_v16 = vpop.permute.xlu1 %993 }
 0x3ba   : > { %v1004_v8 = vsel %vm990_vm1, %v994_v16, 0.0 }
 0x3bb   : > { %v1024_v33 = vmul.f32 %v3119_v57, %v1004_v8  ;;  %v3133_v8 = vld [vmem:[#allocation20_spill] sm:$0xff]  ;;  %v1053_v57 = vpop.permute.xlu0 %1052 }
 0x3bd   : > { %v1028_v29 = vadd.f32 %v1024_v33, %v987_v10  ;;  %v465_v44 = vpop.permute.xlu1 %464 }
 0x3be   : > { %v473_v0 = vsel %vm457_vm3, %v465_v44, 0.0  ;;  %v3134_v44 = vld [vmem:[#allocation35_spill] sm:$0xff] }
 0x3bf   : > { %v1060_v56 = vadd.f32 %v1056_v11, %v1028_v29  ;;  %v493_v39 = vmul.f32 %v3125_v37, %v473_v0  ;;  %v3137_v37 = vld [vmem:[#allocation37_spill] sm:$0xff] }
 0x3c1   : > { %v506_v55 = vpop.permute.xlu1 %505  ;;  %1064 = vxpose.xlu1.b32.cont [2/4] (short) (narrow) %v1060_v56, 16  ;;  %v497_v2 = vadd.f32 %v493_v39, %v456_v45 }
 0x3c2   : > { %v514_v36 = vsel %vm498_vm4, %v506_v55, 0.0  ;;  %v923_v55 = vsel %vm908_vm14, %v914_v3, 0.0 }
 0x3c3   : > { %v534_v42 = vmul.f32 %v3126_v31, %v514_v36  ;;  %v3136_v36 = vld [vmem:[#allocation29_spill] sm:$0xff] }
 0x3c4   : > { %v943_v40 = vmul.f32 %v3136_v36, %v923_v55 }
 0x3c5   : > { %v547_v38 = vpop.permute.xlu1 %546  ;;  %v538_v14 = vadd.f32 %v534_v42, %v497_v2 }
 0x3c6   : > { %v555_v43 = vsel %vm539_vm5, %v547_v38, 0.0  ;;  %v3135_v38 = vld [vmem:[#allocation36_spill] sm:$0xff]  ;;  %v947_v42 = vadd.f32 %v943_v40, %v2853_v24 }
 0x3c7   : > { %v575_v13 = vmul.f32 %v3127_v26, %v555_v43  ;;  %v964_v43 = vsel %vm949_vm15, %v955_v20, 0.0  ;;  %v3139_v26 = vld [vmem:[#allocation31_spill] sm:$0xff]  ;;  %v1096_v20 = vld [vmem:[%s3035_s5 + $0x8] sm:$0xff] }
 0x3c9   : > { %v588_v61 = vpop.permute.xlu1 %587  ;;  %v579_v47 = vadd.f32 %v575_v13, %v538_v14  ;;  %v984_v13 = vmul.f32 %v3139_v26, %v964_v43 }
 0x3ca   : > { %v596_v21 = vsel %vm580_vm6, %v588_v61, 0.0  ;;  %v903_v61 = vmul.f32 %v3135_v38, %v883_v32 }
 0x3cb   : > { %v616_v6 = vmul.f32 %v3128_v46, %v596_v21  ;;  %v3138_v21 = vld [vmem:[#allocation38_spill] sm:$0xff] }
 0x3cd   : > { %v629_v63 = vpop.permute.xlu1 %628  ;;  %v620_v17 = vadd.f32 %v616_v6, %v579_v47 }
 0x3ce   : > { %v637_v41 = vsel %vm621_vm7, %v629_v63, 0.0  ;;  %v998_v63 = vpop.permute.xlu0 %997 }
 0x3cf   : > { %v657_v34 = vmul.f32 %v3129_v60, %v637_v41  ;;  %v1006_v3 = vsel %vm990_vm1, %v998_v63, 0.0  ;;  %v1095_v41 = vld [vmem:[%s3035_s5] sm:$0xff]  ;;  %v988_v60 = vadd.f32 %v984_v13, %v947_v42 }
 0x3d0   : > { %v1026_v14 = vmul.f32 %v2819_v53, %v1006_v3  ;;  %v1098_v53 = vld [vmem:[%s3035_s5 + $0x18] sm:$0xff] }
 0x3d1   : > { %v670_v18 = vpop.permute.xlu1 %669  ;;  %v661_v52 = vadd.f32 %v657_v34, %v620_v17  ;;  %v3140_v34 = vld [vmem:[#allocation33_spill] sm:$0xff] }
 0x3d2   : > { %v678_v59 = vsel %vm662_vm8, %v670_v18, 0.0 }
 0x3d3   : > { %v698_v51 = vmul.f32 %v3130_v5, %v678_v59  ;;  %v1116_v59 = vand.u32 4294901760, %v1096_v20  ;;  %v1097_v5 = vld [vmem:[%s3035_s5 + $0x10] sm:$0xff] }
 0x3d4   : > { %v1119_v62 = vand.u32 4294901760, %v1097_v5 }
 0x3d5   : > { %v711_v12 = vpop.permute.xlu1 %710  ;;  %v702_v1 = vadd.f32 %v698_v51, %v661_v52  ;;  %v1057_v51 = vmul.f32 %v2873_v4, %v2472_v49 }
 0x3d6   : > { %v719_v50 = vsel %vm703_vm9, %v711_v12, 0.0  ;;  %v1113_v12 = vand.u32 4294901760, %v1095_v41 }
 0x3d7   : > { %v739_v30 = vmul.f32 %v3131_v9, %v719_v50 }
 0x3d8   : > { %v2946_v17 = vpack.c.bf16 %v1116_v59, %v1113_v12  ;;  %v1203_v9 = vsub.f32 %v1095_v41, %v1113_v12 }
 0x3d9   : > { %v752_v25 = vpop.permute.xlu1 %751  ;;  %v743_v16 = vadd.f32 %v739_v30, %v702_v1  ;;  %v1210_v30 = vsub.f32 %v1096_v20, %v1116_v59  ;;  %v1058_v1 = vmul.f32 %v1053_v57, %v3123_v58 }
 0x3da   : > { %v760_v23 = vsel %vm744_vm10, %v752_v25, 0.0  ;;  %1888 = vmatprep.subr.bf16.mxu0 %v2946_v17  ;;  %1864 = vmatprep.subr.bf16.mxu1 %v2946_v17  ;;  %v1204_v49 = vand.u32 4294901760, %v1203_v9 }
 0x3db   : > { %v780_v19 = vmul.f32 %v3132_v27, %v760_v23  ;;  %v1122_v23 = vand.u32 4294901760, %v1098_v53  ;;  %1890 = vmatpush3.bf16.msra.mxu0 %v2946_v17  ;;  %1866 = vmatpush3.bf16.msra.mxu1 %v2946_v17  ;;  %v1211_v4 = vand.u32 4294901760, %v1210_v30  ;;  %v1879_v38 = vpack.c.bf16 %v1210_v30, %v1203_v9 }
 0x3dd   : > { %v793_v22 = vpop.permute.xlu1 %792  ;;  %v784_v33 = vadd.f32 %v780_v19, %v743_v16  ;;  %v2960_v52 = vpack.c.bf16 %v1122_v23, %v1119_v62  ;;  %v1895_v19 = vpack.c.bf16 %v1211_v4, %v1204_v49  ;;  %v1217_v16 = vsub.f32 %v1097_v5, %v1119_v62 }
 0x3de   : > { %v801_v35 = vsel %vm785_vm11, %v793_v22, 0.0  ;;  %v1205_v22 = vsub.f32 %v1203_v9, %v1204_v49 }
 0x3df   : > { %v821_v10 = vmul.f32 %v3133_v8, %v801_v35  ;;  %1892 = vmatprep.subr.bf16.mxu0 %v2960_v52  ;;  %1868 = vmatprep.subr.bf16.mxu1 %v2960_v52  ;;  %v1212_v35 = vsub.f32 %v1210_v30, %v1211_v4  ;;  %v1224_v8 = vsub.f32 %v1098_v53, %v1122_v23  ;;  %v1218_v57 = vand.u32 4294901760, %v1217_v16  ;;  %v2056_v53 = vld [vmem:[%s2263_s21] sm:$0xff]  ;;  %v2057_v23 = vld [vmem:[%s2263_s21 + $0x8] sm:$0xff] }
 0x3e0   : > { %1894 = vmatpush3.bf16.msra.mxu0 %v2960_v52  ;;  %1870 = vmatpush3.bf16.msra.mxu1 %v2960_v52  ;;  %v1206_v58 = vand.u32 4294901760, %v1205_v22 }
 0x3e1   : > { %v834_v7 = vpop.permute.xlu1 %833  ;;  %v825_v29 = vadd.f32 %v821_v10, %v784_v33  ;;  %1896 = vmatprep.subr.bf16.mxu0 %v1895_v19  ;;  %v1213_v10 = vand.u32 4294901760, %v1212_v35  ;;  %v1225_v33 = vand.u32 4294901760, %v1224_v8 }
 0x3e2   : > { %v842_v11 = vsel %vm826_vm12, %v834_v7, 0.0 }
 0x3e3   : > { %v862_v56 = vmul.f32 %v3134_v44, %v842_v11  ;;  %v1871_v7 = vpack.c.bf16 %v1213_v10, %v1206_v58  ;;  %v1899_v32 = vpack.c.bf16 %v1225_v33, %v1218_v57  ;;  %v1219_v11 = vsub.f32 %v1217_v16, %v1218_v57 }
 0x3e5   : > { %v866_v0 = vadd.f32 %v862_v56, %v825_v29  ;;  %v916_v48 = vpop.permute.xlu1 %915  ;;  %v1226_v29 = vsub.f32 %v1224_v8, %v1225_v33  ;;  %1872 = vmatprep.subr.bf16.mxu1 %v1871_v7  ;;  %v1220_v44 = vand.u32 4294901760, %v1219_v11 }
 0x3e6   : > { %v924_v28 = vsel %vm908_vm14, %v916_v48, 0.0 }
 0x3e7   : > { %v907_v54 = vadd.f32 %v903_v61, %v866_v0  ;;  %v944_v39 = vmul.f32 %v3137_v37, %v924_v28  ;;  %v1227_v56 = vand.u32 4294901760, %v1226_v29  ;;  %v1883_v61 = vpack.c.bf16 %v1224_v8, %v1217_v16 }
 0x3e9   : > { %v957_v45 = vpop.permute.xlu1 %956  ;;  %v948_v18 = vadd.f32 %v944_v39, %v907_v54  ;;  %v1875_v55 = vpack.c.bf16 %v1227_v56, %v1220_v44 }
 0x3ea   : > { %v965_v31 = vsel %vm949_vm15, %v957_v45, 0.0 }
 0x3eb   : > { %v985_v2 = vmul.f32 %v3138_v21, %v965_v31 }
 0x3ed   : > { %v989_v46 = vadd.f32 %v985_v2, %v948_v18  ;;  %v996_v6 = vpop.permute.xlu1 %995  ;;  %v1751_v2 = vld [vmem:[%s3036_s6] ss:$0 sm:$0xff] }
 0x3ee   : > { %v1005_v24 = vsel %vm990_vm1, %v996_v6, 0.0 }
 0x3ef   : > { %v1030_v47 = vadd.f32 %v1026_v14, %v989_v46  ;;  %v1025_v50 = vmul.f32 %v3140_v34, %v1005_v24 }
 0x3f1   : > { %v1029_v25 = vadd.f32 %v1025_v50, %v988_v60  ;;  %v1062_v27 = vadd.f32 %v1058_v1, %v1030_v47 }
 0x3f3   : > { %v1061_v15 = vadd.f32 %v1057_v51, %v1029_v25 }
 0x3f5   : > { %1065 = vxpose.xlu1.b32.cont [3/4] (short) (narrow) %v1061_v15, 16 }
 0x3f9   : > { %1066 = vxpose.xlu1.b32.end [4/4] (short) (narrow) %v1062_v27, 16 }
 0x46d   : > { %v1079_v0 = vpop.trf.xlu1 }
 0x46e   : > { %v1107_v48 = vsel %vm279_vm0, %v1079_v0, 0 }
 0x46f   : > { %v1181_v28 = vand.u32 4294901760, %v1107_v48 }
 0x471   : > { %v1182_v63 = vsub.f32 %v1107_v48, %v1181_v28  ;;  %v1080_v36 = vpop.trf.xlu1 }
 0x472   : > { %v1110_v40 = vsel %vm279_vm0, %v1080_v36, 0 }
 0x473   : > { %v1191_v54 = vand.u32 4294901760, %v1110_v40  ;;  %v1183_v37 = vand.u32 4294901760, %v1182_v63 }
 0x475   : > { %v1192_v39 = vsub.f32 %v1110_v40, %v1191_v54  ;;  %1838 = vmatprep.mubr.f32.mxu0 %v1183_v37  ;;  %v1184_v43 = vsub.f32 %v1182_v63, %v1183_v37 }
 0x477   : > { %v1185_v45 = vand.u32 4294901760, %v1184_v43  ;;  %v1193_v3 = vand.u32 4294901760, %v1192_v39 }
 0x479   : > { %1805 = vmatprep.mubr.f32.mxu1 %v1185_v45  ;;  %1839 = vmatmul.mubr.f32.vlgmr.msra.gmra.mrb[0].mxu0 %v1193_v3  ;;  %v1194_v31 = vsub.f32 %v1192_v39, %v1193_v3 }
 0x47a   : > { %1898 = vmatpush3.bf16.msra.mxu0 %v1895_v19  ;;  %1849 = vmatprep.mubr.f32.mxu0 %v1181_v28 }
 0x47b   : > { %v1195_v42 = vand.u32 4294901760, %v1194_v31  ;;  %1900 = vmatprep.subr.bf16.mxu0 %v1899_v32 }
 0x47d   : > { %1806 = vmatmul.mubr.f32.vlgmr.msra.gmra.mrb[0].mxu1 %v1195_v42 }
 0x47e   : > { %1874 = vmatpush3.bf16.msra.mxu1 %v1871_v7  ;;  %1816 = vmatprep.mubr.f32.mxu1 %v1181_v28 }
 0x47f   : > { %1902 = vmatpush3.bf16.msra.mxu0 %v1899_v32  ;;  %1876 = vmatprep.subr.bf16.mxu1 %v1875_v55 }
 0x480   : > { %1904 = vmatprep.subr.bf16.mxu0 %v2946_v17 }
 0x482   : > { %1878 = vmatpush3.bf16.msra.mxu1 %v1875_v55  ;;  %1850 = vmatmul.mubr.f32.vlgmr.msra.gmra.mrb[0].mxu0 %v1191_v54 }
 0x483   : > { %1906 = vmatpush3.bf16.msra.mxu0 %v2946_v17  ;;  %1860 = vmatprep.mubr.f32.mxu0 %v1181_v28 }
 0x484   : > { %1880 = vmatprep.subr.bf16.mxu1 %v1879_v38  ;;  %1908 = vmatprep.subr.bf16.mxu0 %v2960_v52 }
 0x485   : > { %1817 = vmatmul.mubr.f32.vlgmr.msra.gmra.mrb[0].mxu1 %v1191_v54 }
 0x486   : > { %1882 = vmatpush3.bf16.msra.mxu1 %v1879_v38  ;;  %1827 = vmatprep.mubr.f32.mxu1 %v1182_v63 }
 0x487   : > { %1910 = vmatpush3.bf16.msra.mxu0 %v2960_v52  ;;  %1884 = vmatprep.subr.bf16.mxu1 %v1883_v61 }
 0x48a   : > { %1886 = vmatpush3.bf16.msra.mxu1 %v1883_v61  ;;  %1861 = vmatmul.mubr.f32.vlgmr.msra.gmra.mrb[0].mxu0 %v1191_v54 }
 0x48d   : > { %1828 = vmatmul.mubr.f32.vlgmr.msra.gmra.mrb[0].mxu1 %v1192_v39 }
 0x55d   : > { %v1862_v18 = vpop.f32.mrb[0].mxu0 }
 0x55e   : > { %v1630_v21 = vpop.f32.mrb[1].mxu0 }
 0x560   : > { %v1829_v26 = vpop.f32.mrb[0].mxu1 }
 0x561   : > { %v1911_v13 = vadd.f32 %v1829_v26, %v1751_v2  ;;  %v1374_v41 = vpop.f32.mrb[1].mxu1 }
 0x562   : > { %v1913_v20 = vadd.f32 %v1751_v2, %v1374_v41 }
 0x563   : > { %v1912_v14 = vadd.f32 %v1911_v13, %v1862_v18 }
 0x564   : > { %v1914_v46 = vadd.f32 %v1913_v20, %v1630_v21 }
 0x565   : > { %v1753_v6 = vmul.f32 -1.442695, %v1912_v14 }
 0x566   : > { %v1752_v12 = vmul.f32 -1.442695, %v1914_v46 }
 0x567   : > { %2048 = vpow2.f32 %v1753_v6 }
 0x568   : > { %2050 = vpow2.f32 %v1752_v12 }
 0x571   : > { %v2049_v59 = vpop.eup %2048 }
 0x572   : > { %v2051_v24 = vpop.eup %2050  ;;  %v1647_v60 = vadd.f32 1.0, %v2049_v59 }
 0x573   : > { %v1646_v47 = vadd.f32 1.0, %v2051_v24 }
 0x575   : > { %2052 = vrcp.f32 %v1646_v47 }
 0x576   : > { %2054 = vrcp.f32 %v1647_v60 }
 0x57f   : > { %v2053_v34 = vpop.eup %2052 }
 0x580   : > { %1654 = vrot.lane.b32.xlu0 %v2053_v34, %s2154_s9  ;;  %v2055_v50 = vpop.eup %2054 }
 0x584   : > { %1656 = vrot.lane.b32.xlu0 %v2055_v50, %s2154_s9 }
 0x5f2   : > { %v1655_v17 = vpop.permute.xlu0 %1654 }
 0x5f3   : > { %v1660_v5 = vmul.f32 %v1914_v46, %v1655_v17 }
 0x5f5   : > { %v1662_v51 = vadd.f32 %v2056_v53, %v1660_v5 }
 0x5f6   : > { %v1657_v25 = vpop.permute.xlu0 %1656 }
 0x5f7   : > { %1664 = vst.msk [vmem:[%s271_s23] sm:$0xff] %vm279_vm0, %v1662_v51  ;;  %v1661_v62 = vmul.f32 %v1912_v14, %v1657_v25 }
 0x5f9   : > { %v1663_v15 = vadd.f32 %v2057_v23, %v1661_v62 }
 0x5fb   : > { %1665 = vst.msk [vmem:[%s271_s23 + $0x8] sm:$0xff] %vm279_vm0, %v1663_v15 }
 0x5fc   : > { %2071 = shalt.err (!%p2068_p3)
}
 0x5fd   : > { %s2072_s21 = scalar_lea.hbm %s2983_s15, 256  ;;  %s2076_s22 = scalar_lea.hbm %s3037_s7, 512 }
 0x5fe   : > { %p2073_p4 = scmp.ne.s32.totalorder %s2983_s15, %s2072_s21  ;;  %p2077_p9 = scmp.lt.u32.totalorder %s2983_s15, %s3037_s7 }
 0x5ff   : > { %p2078_p10 = scmp.lt.u32.totalorder %s2076_s22, %s2072_s21  ;;  %p2080_p12 = scmp.lt.u32.totalorder %s2072_s21, %s2983_s15 }
 0x600   : > { %p2074_p7 = pnand %p2073_p4, %p2236_p5 }
 0x601   : > { %p2079_p11 = por %p2078_p10, %p2077_p9 }
 0x602   : > { %p2075_p8 = pneg %p2074_p7 }
 0x603   : > { %p2081_p13 = por %p2080_p12, %p2079_p11 }
 0x605   : > { %p2082_p0 = pnand %p2081_p13, %p2075_p8 }
 0x607   : > { %2085 = shalt.err (!%p2082_p0)
}
 0x608   : > { %s2156_s13 = smov 128   ;;  %s2157_s14 = smov 8  }
 0x609   : > { %1923 = dma.vmem_to_hbm [thread:$0]  (%p2236_p5), %s2985_s29, 256, %s2983_s15, %s2989_s17, %s2156_s13, %s2156_s13, %s2157_s14  }
 0x60a PF: > { %p1929_p1 = scmp.ge.s32.totalorder %s2120_s27, 2  ;;  %s1695_s28 = sand.u32 1, %s2108_s24  }
 0x60b   : > { %s1696_s18 = scalar_lea.sflag [#allocation3], %s1695_s28 }
 0x60c   : > { %p1926_p2 = pnand %p1929_p1, %p2240_p6 }
 0x60e   : > { %2103 = dma.done.wait (!%p1926_p2), %s1696_s18, 256  }
 0x60f   : > { %2105 = vsyncadd (!%p1926_p2), %s1696_s18, 4294967040  ;;  %p17_p3 = scmp.ge.s32.totalorder %s2223_s30, 4   ;;  %s3141_s24 = smov %s2112_s25 }
 0x610   : > { %s3142_s25 = smov %s2116_s26  ;;  %s3143_s26 = smov %s2234_s10 }
 0x611   : > { %s3144_s27 = smov %s2223_s30  ;;  %19 = sbr.rel (!%p17_p3) target bundleno = 3 (0x3), region = 83 }
 0x618   :  { %1701 = vsyncpa [#allocation3], 1 }
 0x619   :  { %1703 = vsyncpa [#allocation3 + $0x1], 1 }

</bundles_post_ra>
